<compile_context>
chip_gen: v7x
topology: tpu7x:2x2x1
jax: 0.10.0
libtpu: 0.0.40
codegen_flags: <defaults>
</compile_context>

<pallas_src>
import math

import jax
import jax.numpy as jnp
from jax.experimental import pallas as pl
from jax.experimental.pallas import tpu as pltpu

# ----------------------- small-BERT config -----------------------
VOCAB       = 100    # vocab size (bert-base: 30522)
TYPE_VOCAB  = 2
MAX_POS     = 16     # max position embeddings (bert-base: 512)
HIDDEN      = 32     # hidden size (bert-base: 768)
NUM_HEADS   = 4      # (bert-base: 12)
HEAD_DIM    = HIDDEN // NUM_HEADS
INTER       = 128    # FFN intermediate (bert-base: 3072)
NUM_LAYERS  = 2      # (bert-base: 12)
NUM_CLASSES = 3      # len(tags) is 0 in the snippet; pick a small nonzero C
LN_EPS      = 1e-12  # BERT layernorm eps


# ----------------------- in-kernel helpers -----------------------
def _layernorm(x, gamma, beta):
    mu = jnp.mean(x, axis=-1, keepdims=True)
    var = jnp.mean((x - mu) ** 2, axis=-1, keepdims=True)
    return (x - mu) * jax.lax.rsqrt(var + LN_EPS) * gamma + beta


def _gelu(x):
    # exact (erf-based) GELU, as used by BERT
    return 0.5 * x * (1.0 + jax.lax.erf(x / math.sqrt(2.0)))


def _softmax_last(x, approx=False):
    m = jnp.max(x, axis=-1, keepdims=True)
    e = jnp.exp(x - m)
    s = jnp.sum(e, axis=-1, keepdims=True)
    if approx:
        # EUP reciprocal: frees the VALU divide slot.
        return e * pl.reciprocal(s, approx=True)
    return e / s


# ----------------------- fused Pallas kernel -----------------------
def fused_bert_kernel(emb_ref, madd_ref, eg_ref, eb_ref,
                      wqkv_ref, bqkv_ref, wo_ref, bo_ref,
                      g1_ref, b1_ref, wi_ref, bi_ref,
                      wo2_ref, bo2_ref, g2_ref, b2_ref,
                      cw_ref, cb_ref,
                      out_ref,
                      hid_ref):
    """One grid step == one encoder layer; hidden stays resident in VMEM scratch."""
    l = pl.program_id(0)
    B, _, S = madd_ref.shape          # madd: [B, 1, S]
    H = hid_ref.shape[-1]             # hid:  [B*S, H]

    # Layer 0: embedding LayerNorm into the resident hidden scratch.
    @pl.when(l == 0)
    def _():
        hid_ref[...] = _layernorm(emb_ref[...], eg_ref[...], eb_ref[...])

    x = hid_ref[...]                  # [B*S, H]

    # ---------------- self-attention (fused QKV) ----------------
    qkv = jnp.dot(x, wqkv_ref[0], preferred_element_type=jnp.float32) + bqkv_ref[0]
    q = qkv[:, 0 * H:1 * H].reshape(B, S, H)
    k = qkv[:, 1 * H:2 * H].reshape(B, S, H)
    v = qkv[:, 2 * H:3 * H].reshape(B, S, H)

    madd = madd_ref[...]              # [B, 1, S] additive mask (0 or -1e9) over keys
    scale = 1.0 / math.sqrt(HEAD_DIM)

    ctx_heads = []
    for h in range(NUM_HEADS):        # static loop; each einsum is batched over B
        lo, hi = h * HEAD_DIM, (h + 1) * HEAD_DIM
        scores = jnp.einsum('bqd,bkd->bqk', q[..., lo:hi], k[..., lo:hi],
                            preferred_element_type=jnp.float32) * scale + madd
        probs = _softmax_last(scores, approx=True)
        ctx_heads.append(jnp.einsum('bqk,bkd->bqd', probs, v[..., lo:hi],
                                    preferred_element_type=jnp.float32))
    ctx = jnp.concatenate(ctx_heads, axis=-1).reshape(B * S, H)

    attn = jnp.dot(ctx, wo_ref[0], preferred_element_type=jnp.float32) + bo_ref[0]
    x1 = _layernorm(x + attn, g1_ref[0], b1_ref[0])

    # ---------------- feed-forward ----------------
    inter = _gelu(jnp.dot(x1, wi_ref[0], preferred_element_type=jnp.float32) + bi_ref[0])
    ffn = jnp.dot(inter, wo2_ref[0], preferred_element_type=jnp.float32) + bo2_ref[0]
    x2 = _layernorm(x1 + ffn, g2_ref[0], b2_ref[0])
    hid_ref[...] = x2

    # Last layer: classifier head.
    # TODO(synk): train-mode Dropout(p=0.4) not applied (eval-mode identity).
    @pl.when(l == pl.num_programs(0) - 1)
    def _():
        # CLS token = row b*S of the flattened hidden slab.
        cls = jnp.concatenate([x2[b * S:b * S + 1, :] for b in range(B)], axis=0)
        logits = jnp.dot(cls, cw_ref[...],
                         preferred_element_type=jnp.float32) + cb_ref[...]
        out_ref[...] = _softmax_last(logits, approx=False)


# ----------------------- wrapper (pallas_call glue) -----------------------
_LAYER_KEYS = ("wqkv", "bqkv", "wo", "bo", "ln1_g", "ln1_b",
               "wi", "bi", "wo2", "bo2", "ln2_g", "ln2_b")


def bert_classifier_forward(params, input_ids, attention_mask):
    B, S = input_ids.shape
    H = HIDDEN

    # Embedding gathers are glue in plain JAX; everything else is one Pallas kernel.
    emb = (params["word_emb"][input_ids]
           + params["pos_emb"][jnp.arange(S)][None, :, :]
           + params["type_emb"][jnp.zeros((B, S), jnp.int32)])
    emb2d = emb.reshape(B * S, H).astype(jnp.float32)

    # Additive key mask, shaped [B, 1, S] so it broadcasts over query rows per batch.
    madd = ((1.0 - attention_mask.astype(jnp.float32)) * -1e9).reshape(B, 1, S)

    weights = [params["stack"][k] for k in _LAYER_KEYS]   # each is [L, ...]

    in_specs = [
        pl.BlockSpec((B * S, H), lambda l: (0, 0)),        # emb2d
        pl.BlockSpec((B, 1, S), lambda l: (0, 0, 0)),      # additive mask
        pl.BlockSpec((1, H), lambda l: (0, 0)),            # emb LN gamma
        pl.BlockSpec((1, H), lambda l: (0, 0)),            # emb LN beta
    ]
    for w in weights:                                      # per-layer stacked weights
        in_specs.append(pl.BlockSpec((1,) + w.shape[1:], lambda l: (l, 0, 0)))
    in_specs += [
        pl.BlockSpec((H, NUM_CLASSES), lambda l: (0, 0)),  # classifier W
        pl.BlockSpec((1, NUM_CLASSES), lambda l: (0, 0)),  # classifier b
    ]

    return pl.pallas_call(
        fused_bert_kernel,
        out_shape=jax.ShapeDtypeStruct((B, NUM_CLASSES), jnp.float32),
        grid_spec=pltpu.PrefetchScalarGridSpec(
            num_scalar_prefetch=0,
            grid=(NUM_LAYERS,),
            in_specs=in_specs,
            out_specs=pl.BlockSpec((B, NUM_CLASSES), lambda l: (0, 0)),
            scratch_shapes=[pltpu.VMEM((B * S, H), jnp.float32)],
        ),
        compiler_params=pltpu.CompilerParams(
            dimension_semantics=("arbitrary",)),   # hidden carried across layer axis
    )(emb2d, madd, params["emb_ln_g"], params["emb_ln_b"],
      *weights, params["cls_w"], params["cls_b"])


# ----------------------- parameter init (deterministic) -----------------------
def init_params(key):
    def dense(k, fan_in, fan_out):
        return jax.random.normal(k, (fan_in, fan_out), jnp.float32) * 0.02

    keys = jax.random.split(key, 4 + NUM_LAYERS)
    params = {
        "word_emb": jax.random.normal(keys[0], (VOCAB, HIDDEN), jnp.float32) * 0.02,
        "pos_emb":  jax.random.normal(keys[1], (MAX_POS, HIDDEN), jnp.float32) * 0.02,
        "type_emb": jax.random.normal(keys[2], (TYPE_VOCAB, HIDDEN), jnp.float32) * 0.02,
        "emb_ln_g": jnp.ones((1, HIDDEN), jnp.float32),
        "emb_ln_b": jnp.zeros((1, HIDDEN), jnp.float32),
    }

    layers = []
    for li in range(NUM_LAYERS):
        lk = jax.random.split(keys[4 + li], 4)
        layers.append({
            "wqkv": dense(lk[0], HIDDEN, 3 * HIDDEN),            # fused Q|K|V
            "bqkv": jnp.zeros((1, 3 * HIDDEN), jnp.float32),
            "wo":   dense(lk[1], HIDDEN, HIDDEN),
            "bo":   jnp.zeros((1, HIDDEN), jnp.float32),
            "ln1_g": jnp.ones((1, HIDDEN), jnp.float32),
            "ln1_b": jnp.zeros((1, HIDDEN), jnp.float32),
            "wi":   dense(lk[2], HIDDEN, INTER),
            "bi":   jnp.zeros((1, INTER), jnp.float32),
            "wo2":  dense(lk[3], INTER, HIDDEN),
            "bo2":  jnp.zeros((1, HIDDEN), jnp.float32),
            "ln2_g": jnp.ones((1, HIDDEN), jnp.float32),
            "ln2_b": jnp.zeros((1, HIDDEN), jnp.float32),
        })
    # Stack per-layer weights into [L, ...] arrays for the layer grid axis.
    params["stack"] = {k: jnp.stack([lp[k] for lp in layers], axis=0)
                       for k in _LAYER_KEYS}

    kcw, _ = jax.random.split(keys[3])
    params["cls_w"] = dense(kcw, HIDDEN, NUM_CLASSES)
    params["cls_b"] = jnp.zeros((1, NUM_CLASSES), jnp.float32)
    return params


if __name__ == "__main__":
    key = jax.random.PRNGKey(0)
    pkey, ikey = jax.random.split(key)

    params = init_params(pkey)

    B, S = 2, 8
    input_ids = jax.random.randint(ikey, (B, S), 0, VOCAB, dtype=jnp.int32)
    attention_mask = jnp.array([[1, 1, 1, 1, 1, 1, 1, 1],
                                [1, 1, 1, 1, 1, 0, 0, 0]], jnp.int32)

    fwd = jax.jit(bert_classifier_forward)
    probs = fwd(params, input_ids, attention_mask)
    probs = jax.block_until_ready(probs)

    assert probs.shape == (B, NUM_CLASSES)
    assert bool(jnp.all(jnp.abs(jnp.sum(probs, axis=-1) - 1.0) < 1e-3))
    assert bool(jnp.all(jnp.isfinite(probs)))
    print("KERNEL_OK")
</pallas_src>

<mosaic_0001>
module attributes {stable_mosaic.version = 11 : i64} {
  func.func @fused_bert_kernel(%arg0: i32, %arg1: memref<16x32xf32, #tpu.memory_space<vmem>>, %arg2: memref<2x1x8xf32, #tpu.memory_space<vmem>>, %arg3: memref<1x32xf32, #tpu.memory_space<vmem>>, %arg4: memref<1x32xf32, #tpu.memory_space<vmem>>, %arg5: memref<1x32x96xf32, #tpu.memory_space<vmem>>, %arg6: memref<1x1x96xf32, #tpu.memory_space<vmem>>, %arg7: memref<1x32x32xf32, #tpu.memory_space<vmem>>, %arg8: memref<1x1x32xf32, #tpu.memory_space<vmem>>, %arg9: memref<1x1x32xf32, #tpu.memory_space<vmem>>, %arg10: memref<1x1x32xf32, #tpu.memory_space<vmem>>, %arg11: memref<1x32x128xf32, #tpu.memory_space<vmem>>, %arg12: memref<1x1x128xf32, #tpu.memory_space<vmem>>, %arg13: memref<1x128x32xf32, #tpu.memory_space<vmem>>, %arg14: memref<1x1x32xf32, #tpu.memory_space<vmem>>, %arg15: memref<1x1x32xf32, #tpu.memory_space<vmem>>, %arg16: memref<1x1x32xf32, #tpu.memory_space<vmem>>, %arg17: memref<32x3xf32, #tpu.memory_space<vmem>>, %arg18: memref<1x3xf32, #tpu.memory_space<vmem>>, %arg19: memref<2x3xf32, #tpu.memory_space<vmem>>, %arg20: memref<16x32xf32, #tpu.memory_space<vmem>>) attributes {dimension_semantics = [#tpu.dimension_semantics<arbitrary>], iteration_bounds = array<i64: 2>, scalar_prefetch = 0 : i64, scratch_operands = 1 : i64, tpu.core_type = #tpu.core_type<tc>, window_params = [{pipeline_mode = #tpu.pipeline_mode<synchronous>, transform_indices = @transform_0, window_bounds = array<i64: 16, 32>}, {pipeline_mode = #tpu.pipeline_mode<synchronous>, transform_indices = @transform_1, window_bounds = array<i64: 2, 1, 8>}, {pipeline_mode = #tpu.pipeline_mode<synchronous>, transform_indices = @transform_2, window_bounds = array<i64: 1, 32>}, {pipeline_mode = #tpu.pipeline_mode<synchronous>, transform_indices = @transform_3, window_bounds = array<i64: 1, 32>}, {transform_indices = @transform_4, window_bounds = array<i64: 1, 32, 96>}, {transform_indices = @transform_5, window_bounds = array<i64: 1, 1, 96>}, {transform_indices = @transform_6, window_bounds = array<i64: 1, 32, 32>}, {transform_indices = @transform_7, window_bounds = array<i64: 1, 1, 32>}, {transform_indices = @transform_8, window_bounds = array<i64: 1, 1, 32>}, {transform_indices = @transform_9, window_bounds = array<i64: 1, 1, 32>}, {transform_indices = @transform_10, window_bounds = array<i64: 1, 32, 128>}, {transform_indices = @transform_11, window_bounds = array<i64: 1, 1, 128>}, {transform_indices = @transform_12, window_bounds = array<i64: 1, 128, 32>}, {transform_indices = @transform_13, window_bounds = array<i64: 1, 1, 32>}, {transform_indices = @transform_14, window_bounds = array<i64: 1, 1, 32>}, {transform_indices = @transform_15, window_bounds = array<i64: 1, 1, 32>}, {pipeline_mode = #tpu.pipeline_mode<synchronous>, transform_indices = @transform_16, window_bounds = array<i64: 32, 3>}, {pipeline_mode = #tpu.pipeline_mode<synchronous>, transform_indices = @transform_17, window_bounds = array<i64: 1, 3>}, {pipeline_mode = #tpu.pipeline_mode<synchronous>, transform_indices = @transform_18, window_bounds = array<i64: 2, 3>}]} {
    %c0_i32 = arith.constant 0 : i32
    %0 = arith.cmpi eq, %arg0, %c0_i32 : i32
    %1 = arith.extui %0 : i1 to i32
    %c0_i32_0 = arith.constant 0 : i32
    %2 = arith.cmpi ne, %1, %c0_i32_0 : i32
    scf.if %2 {
      %c0_80 = arith.constant 0 : index
      %c0_81 = arith.constant 0 : index
      %183 = vector.load %arg1[%c0_80, %c0_81] : memref<16x32xf32, #tpu.memory_space<vmem>>, vector<16x32xf32>
      %c0_82 = arith.constant 0 : index
      %c0_83 = arith.constant 0 : index
      %184 = vector.load %arg3[%c0_82, %c0_83] : memref<1x32xf32, #tpu.memory_space<vmem>>, vector<1x32xf32>
      %c0_84 = arith.constant 0 : index
      %c0_85 = arith.constant 0 : index
      %185 = vector.load %arg4[%c0_84, %c0_85] : memref<1x32xf32, #tpu.memory_space<vmem>>, vector<1x32xf32>
      %cst_86 = arith.constant dense<0.000000e+00> : vector<16xf32>
      %186 = vector.multi_reduction <add>, %183, %cst_86 [1] : vector<16x32xf32> to vector<16xf32>
      %187 = vector.shape_cast %186 : vector<16xf32> to vector<16x1xf32>
      %cst_87 = arith.constant 3.200000e+01 : f32
      %188 = vector.broadcast %cst_87 : f32 to vector<16x1xf32>
      %189 = arith.divf %187, %188 : vector<16x1xf32>
      %190 = vector.broadcast %189 : vector<16x1xf32> to vector<16x32xf32>
      %191 = arith.subf %183, %190 : vector<16x32xf32>
      %192 = arith.mulf %191, %191 : vector<16x32xf32>
      %cst_88 = arith.constant dense<0.000000e+00> : vector<16xf32>
      %193 = vector.multi_reduction <add>, %192, %cst_88 [1] : vector<16x32xf32> to vector<16xf32>
      %194 = vector.shape_cast %193 : vector<16xf32> to vector<16x1xf32>
      %cst_89 = arith.constant 3.200000e+01 : f32
      %195 = vector.broadcast %cst_89 : f32 to vector<16x1xf32>
      %196 = arith.divf %194, %195 : vector<16x1xf32>
      %197 = vector.broadcast %189 : vector<16x1xf32> to vector<16x32xf32>
      %198 = arith.subf %183, %197 : vector<16x32xf32>
      %cst_90 = arith.constant 9.99999996E-13 : f32
      %199 = vector.broadcast %cst_90 : f32 to vector<16x1xf32>
      %200 = arith.addf %196, %199 : vector<16x1xf32>
      %201 = math.rsqrt %200 : vector<16x1xf32>
      %202 = vector.broadcast %201 : vector<16x1xf32> to vector<16x32xf32>
      %203 = arith.mulf %198, %202 : vector<16x32xf32>
      %204 = vector.broadcast %184 : vector<1x32xf32> to vector<16x32xf32>
      %205 = arith.mulf %203, %204 : vector<16x32xf32>
      %206 = vector.broadcast %185 : vector<1x32xf32> to vector<16x32xf32>
      %207 = arith.addf %205, %206 : vector<16x32xf32>
      %c0_91 = arith.constant 0 : index
      %c0_92 = arith.constant 0 : index
      %208 = vector.load %arg20[%c0_91, %c0_92] : memref<16x32xf32, #tpu.memory_space<vmem>>, vector<16x32xf32>
      tpu.vector_store %arg20[%c0_91, %c0_92], %207 {strides = array<i32>} : memref<16x32xf32, #tpu.memory_space<vmem>>, vector<16x32xf32>,
    } else {
    }
    %c0 = arith.constant 0 : index
    %c0_1 = arith.constant 0 : index
    %3 = vector.load %arg20[%c0, %c0_1] : memref<16x32xf32, #tpu.memory_space<vmem>>, vector<16x32xf32>
    %c0_2 = arith.constant 0 : index
    %c0_3 = arith.constant 0 : index
    %c0_4 = arith.constant 0 : index
    %4 = vector.load %arg5[%c0_2, %c0_3, %c0_4] : memref<1x32x96xf32, #tpu.memory_space<vmem>>, vector<1x32x96xf32>
    %5 = vector.shape_cast %4 : vector<1x32x96xf32> to vector<32x96xf32>
    %cst = arith.constant dense<0.000000e+00> : vector<16x96xf32>
    %6 = tpu.matmul %3, %5, %cst {dimension_numbers = #tpu.dot_dimension_numbers<[1], [0], [0], [1], [0, 0, 1, 1], [], []>} : vector<16x32xf32>, vector<32x96xf32>, vector<16x96xf32> -> vector<16x96xf32>
    %c0_5 = arith.constant 0 : index
    %c0_6 = arith.constant 0 : index
    %c0_7 = arith.constant 0 : index
    %7 = vector.load %arg6[%c0_5, %c0_6, %c0_7] : memref<1x1x96xf32, #tpu.memory_space<vmem>>, vector<1x1x96xf32>
    %8 = vector.shape_cast %7 : vector<1x1x96xf32> to vector<1x96xf32>
    %9 = vector.broadcast %8 : vector<1x96xf32> to vector<16x96xf32>
    %10 = arith.addf %6, %9 : vector<16x96xf32>
    %11 = vector.extract_strided_slice %10 {offsets = [0, 0], sizes = [16, 32], strides = [1, 1]} : vector<16x96xf32> to vector<16x32xf32>
    %12 = vector.shape_cast %11 : vector<16x32xf32> to vector<2x8x32xf32>
    %13 = vector.extract_strided_slice %10 {offsets = [0, 32], sizes = [16, 32], strides = [1, 1]} : vector<16x96xf32> to vector<16x32xf32>
    %14 = vector.shape_cast %13 : vector<16x32xf32> to vector<2x8x32xf32>
    %15 = vector.extract_strided_slice %10 {offsets = [0, 64], sizes = [16, 32], strides = [1, 1]} : vector<16x96xf32> to vector<16x32xf32>
    %16 = vector.shape_cast %15 : vector<16x32xf32> to vector<2x8x32xf32>
    %c0_8 = arith.constant 0 : index
    %c0_9 = arith.constant 0 : index
    %c0_10 = arith.constant 0 : index
    %17 = vector.load %arg2[%c0_8, %c0_9, %c0_10] : memref<2x1x8xf32, #tpu.memory_space<vmem>>, vector<2x1x8xf32>
    %18 = vector.extract_strided_slice %12 {offsets = [0, 0, 0], sizes = [2, 8, 8], strides = [1, 1, 1]} : vector<2x8x32xf32> to vector<2x8x8xf32>
    %19 = vector.extract_strided_slice %14 {offsets = [0, 0, 0], sizes = [2, 8, 8], strides = [1, 1, 1]} : vector<2x8x32xf32> to vector<2x8x8xf32>
    "tpu.trace_start"() <{level = 10 : i32, message = "bqd,bkd->bqk"}> : () -> ()
    %cst_11 = arith.constant dense<0.000000e+00> : vector<2x8x8xf32>
    %20 = tpu.matmul %18, %19, %cst_11 {dimension_numbers = #tpu.dot_dimension_numbers<[2], [2], [1], [1], [0, 0, 0, 1, 1, 1], [0], [0]>} : vector<2x8x8xf32>, vector<2x8x8xf32>, vector<2x8x8xf32> -> vector<2x8x8xf32>
    "tpu.trace_stop"() : () -> ()
    %cst_12 = arith.constant 0.353553385 : f32
    %21 = vector.broadcast %cst_12 : f32 to vector<2x8x8xf32>
    %22 = arith.mulf %20, %21 : vector<2x8x8xf32>
    %23 = vector.broadcast %17 : vector<2x1x8xf32> to vector<2x8x8xf32>
    %24 = arith.addf %22, %23 : vector<2x8x8xf32>
    %cst_13 = arith.constant dense<0xFF800000> : vector<2x8xf32>
    %25 = vector.multi_reduction <maximumf>, %24, %cst_13 [2] : vector<2x8x8xf32> to vector<2x8xf32>
    %26 = vector.shape_cast %25 : vector<2x8xf32> to vector<2x8x1xf32>
    %27 = vector.broadcast %26 : vector<2x8x1xf32> to vector<2x8x8xf32>
    %28 = arith.subf %24, %27 : vector<2x8x8xf32>
    %29 = math.exp %28 : vector<2x8x8xf32>
    %cst_14 = arith.constant dense<0.000000e+00> : vector<2x8xf32>
    %30 = vector.multi_reduction <add>, %29, %cst_14 [2] : vector<2x8x8xf32> to vector<2x8xf32>
    %31 = vector.shape_cast %30 : vector<2x8xf32> to vector<2x8x1xf32>
    %32 = tpu.reciprocal %31 {approx = true} : vector<2x8x1xf32> -> vector<2x8x1xf32>
    %33 = vector.broadcast %32 : vector<2x8x1xf32> to vector<2x8x8xf32>
    %34 = arith.mulf %29, %33 : vector<2x8x8xf32>
    %35 = vector.extract_strided_slice %16 {offsets = [0, 0, 0], sizes = [2, 8, 8], strides = [1, 1, 1]} : vector<2x8x32xf32> to vector<2x8x8xf32>
    "tpu.trace_start"() <{level = 10 : i32, message = "bqk,bkd->bqd"}> : () -> ()
    %cst_15 = arith.constant dense<0.000000e+00> : vector<2x8x8xf32>
    %36 = tpu.matmul %34, %35, %cst_15 {dimension_numbers = #tpu.dot_dimension_numbers<[2], [1], [1], [2], [0, 0, 0, 1, 1, 2], [0], [0]>} : vector<2x8x8xf32>, vector<2x8x8xf32>, vector<2x8x8xf32> -> vector<2x8x8xf32>
    "tpu.trace_stop"() : () -> ()
    %37 = vector.extract_strided_slice %12 {offsets = [0, 0, 8], sizes = [2, 8, 8], strides = [1, 1, 1]} : vector<2x8x32xf32> to vector<2x8x8xf32>
    %38 = vector.extract_strided_slice %14 {offsets = [0, 0, 8], sizes = [2, 8, 8], strides = [1, 1, 1]} : vector<2x8x32xf32> to vector<2x8x8xf32>
    "tpu.trace_start"() <{level = 10 : i32, message = "bqd,bkd->bqk"}> : () -> ()
    %cst_16 = arith.constant dense<0.000000e+00> : vector<2x8x8xf32>
    %39 = tpu.matmul %37, %38, %cst_16 {dimension_numbers = #tpu.dot_dimension_numbers<[2], [2], [1], [1], [0, 0, 0, 1, 1, 1], [0], [0]>} : vector<2x8x8xf32>, vector<2x8x8xf32>, vector<2x8x8xf32> -> vector<2x8x8xf32>
    "tpu.trace_stop"() : () -> ()
    %cst_17 = arith.constant 0.353553385 : f32
    %40 = vector.broadcast %cst_17 : f32 to vector<2x8x8xf32>
    %41 = arith.mulf %39, %40 : vector<2x8x8xf32>
    %42 = vector.broadcast %17 : vector<2x1x8xf32> to vector<2x8x8xf32>
    %43 = arith.addf %41, %42 : vector<2x8x8xf32>
    %cst_18 = arith.constant dense<0xFF800000> : vector<2x8xf32>
    %44 = vector.multi_reduction <maximumf>, %43, %cst_18 [2] : vector<2x8x8xf32> to vector<2x8xf32>
    %45 = vector.shape_cast %44 : vector<2x8xf32> to vector<2x8x1xf32>
    %46 = vector.broadcast %45 : vector<2x8x1xf32> to vector<2x8x8xf32>
    %47 = arith.subf %43, %46 : vector<2x8x8xf32>
    %48 = math.exp %47 : vector<2x8x8xf32>
    %cst_19 = arith.constant dense<0.000000e+00> : vector<2x8xf32>
    %49 = vector.multi_reduction <add>, %48, %cst_19 [2] : vector<2x8x8xf32> to vector<2x8xf32>
    %50 = vector.shape_cast %49 : vector<2x8xf32> to vector<2x8x1xf32>
    %51 = tpu.reciprocal %50 {approx = true} : vector<2x8x1xf32> -> vector<2x8x1xf32>
    %52 = vector.broadcast %51 : vector<2x8x1xf32> to vector<2x8x8xf32>
    %53 = arith.mulf %48, %52 : vector<2x8x8xf32>
    %54 = vector.extract_strided_slice %16 {offsets = [0, 0, 8], sizes = [2, 8, 8], strides = [1, 1, 1]} : vector<2x8x32xf32> to vector<2x8x8xf32>
    "tpu.trace_start"() <{level = 10 : i32, message = "bqk,bkd->bqd"}> : () -> ()
    %cst_20 = arith.constant dense<0.000000e+00> : vector<2x8x8xf32>
    %55 = tpu.matmul %53, %54, %cst_20 {dimension_numbers = #tpu.dot_dimension_numbers<[2], [1], [1], [2], [0, 0, 0, 1, 1, 2], [0], [0]>} : vector<2x8x8xf32>, vector<2x8x8xf32>, vector<2x8x8xf32> -> vector<2x8x8xf32>
    "tpu.trace_stop"() : () -> ()
    %56 = vector.extract_strided_slice %12 {offsets = [0, 0, 16], sizes = [2, 8, 8], strides = [1, 1, 1]} : vector<2x8x32xf32> to vector<2x8x8xf32>
    %57 = vector.extract_strided_slice %14 {offsets = [0, 0, 16], sizes = [2, 8, 8], strides = [1, 1, 1]} : vector<2x8x32xf32> to vector<2x8x8xf32>
    "tpu.trace_start"() <{level = 10 : i32, message = "bqd,bkd->bqk"}> : () -> ()
    %cst_21 = arith.constant dense<0.000000e+00> : vector<2x8x8xf32>
    %58 = tpu.matmul %56, %57, %cst_21 {dimension_numbers = #tpu.dot_dimension_numbers<[2], [2], [1], [1], [0, 0, 0, 1, 1, 1], [0], [0]>} : vector<2x8x8xf32>, vector<2x8x8xf32>, vector<2x8x8xf32> -> vector<2x8x8xf32>
    "tpu.trace_stop"() : () -> ()
    %cst_22 = arith.constant 0.353553385 : f32
    %59 = vector.broadcast %cst_22 : f32 to vector<2x8x8xf32>
    %60 = arith.mulf %58, %59 : vector<2x8x8xf32>
    %61 = vector.broadcast %17 : vector<2x1x8xf32> to vector<2x8x8xf32>
    %62 = arith.addf %60, %61 : vector<2x8x8xf32>
    %cst_23 = arith.constant dense<0xFF800000> : vector<2x8xf32>
    %63 = vector.multi_reduction <maximumf>, %62, %cst_23 [2] : vector<2x8x8xf32> to vector<2x8xf32>
    %64 = vector.shape_cast %63 : vector<2x8xf32> to vector<2x8x1xf32>
    %65 = vector.broadcast %64 : vector<2x8x1xf32> to vector<2x8x8xf32>
    %66 = arith.subf %62, %65 : vector<2x8x8xf32>
    %67 = math.exp %66 : vector<2x8x8xf32>
    %cst_24 = arith.constant dense<0.000000e+00> : vector<2x8xf32>
    %68 = vector.multi_reduction <add>, %67, %cst_24 [2] : vector<2x8x8xf32> to vector<2x8xf32>
    %69 = vector.shape_cast %68 : vector<2x8xf32> to vector<2x8x1xf32>
    %70 = tpu.reciprocal %69 {approx = true} : vector<2x8x1xf32> -> vector<2x8x1xf32>
    %71 = vector.broadcast %70 : vector<2x8x1xf32> to vector<2x8x8xf32>
    %72 = arith.mulf %67, %71 : vector<2x8x8xf32>
    %73 = vector.extract_strided_slice %16 {offsets = [0, 0, 16], sizes = [2, 8, 8], strides = [1, 1, 1]} : vector<2x8x32xf32> to vector<2x8x8xf32>
    "tpu.trace_start"() <{level = 10 : i32, message = "bqk,bkd->bqd"}> : () -> ()
    %cst_25 = arith.constant dense<0.000000e+00> : vector<2x8x8xf32>
    %74 = tpu.matmul %72, %73, %cst_25 {dimension_numbers = #tpu.dot_dimension_numbers<[2], [1], [1], [2], [0, 0, 0, 1, 1, 2], [0], [0]>} : vector<2x8x8xf32>, vector<2x8x8xf32>, vector<2x8x8xf32> -> vector<2x8x8xf32>
    "tpu.trace_stop"() : () -> ()
    %75 = vector.extract_strided_slice %12 {offsets = [0, 0, 24], sizes = [2, 8, 8], strides = [1, 1, 1]} : vector<2x8x32xf32> to vector<2x8x8xf32>
    %76 = vector.extract_strided_slice %14 {offsets = [0, 0, 24], sizes = [2, 8, 8], strides = [1, 1, 1]} : vector<2x8x32xf32> to vector<2x8x8xf32>
    "tpu.trace_start"() <{level = 10 : i32, message = "bqd,bkd->bqk"}> : () -> ()
    %cst_26 = arith.constant dense<0.000000e+00> : vector<2x8x8xf32>
    %77 = tpu.matmul %75, %76, %cst_26 {dimension_numbers = #tpu.dot_dimension_numbers<[2], [2], [1], [1], [0, 0, 0, 1, 1, 1], [0], [0]>} : vector<2x8x8xf32>, vector<2x8x8xf32>, vector<2x8x8xf32> -> vector<2x8x8xf32>
    "tpu.trace_stop"() : () -> ()
    %cst_27 = arith.constant 0.353553385 : f32
    %78 = vector.broadcast %cst_27 : f32 to vector<2x8x8xf32>
    %79 = arith.mulf %77, %78 : vector<2x8x8xf32>
    %80 = vector.broadcast %17 : vector<2x1x8xf32> to vector<2x8x8xf32>
    %81 = arith.addf %79, %80 : vector<2x8x8xf32>
    %cst_28 = arith.constant dense<0xFF800000> : vector<2x8xf32>
    %82 = vector.multi_reduction <maximumf>, %81, %cst_28 [2] : vector<2x8x8xf32> to vector<2x8xf32>
    %83 = vector.shape_cast %82 : vector<2x8xf32> to vector<2x8x1xf32>
    %84 = vector.broadcast %83 : vector<2x8x1xf32> to vector<2x8x8xf32>
    %85 = arith.subf %81, %84 : vector<2x8x8xf32>
    %86 = math.exp %85 : vector<2x8x8xf32>
    %cst_29 = arith.constant dense<0.000000e+00> : vector<2x8xf32>
    %87 = vector.multi_reduction <add>, %86, %cst_29 [2] : vector<2x8x8xf32> to vector<2x8xf32>
    %88 = vector.shape_cast %87 : vector<2x8xf32> to vector<2x8x1xf32>
    %89 = tpu.reciprocal %88 {approx = true} : vector<2x8x1xf32> -> vector<2x8x1xf32>
    %90 = vector.broadcast %89 : vector<2x8x1xf32> to vector<2x8x8xf32>
    %91 = arith.mulf %86, %90 : vector<2x8x8xf32>
    %92 = vector.extract_strided_slice %16 {offsets = [0, 0, 24], sizes = [2, 8, 8], strides = [1, 1, 1]} : vector<2x8x32xf32> to vector<2x8x8xf32>
    "tpu.trace_start"() <{level = 10 : i32, message = "bqk,bkd->bqd"}> : () -> ()
    %cst_30 = arith.constant dense<0.000000e+00> : vector<2x8x8xf32>
    %93 = tpu.matmul %91, %92, %cst_30 {dimension_numbers = #tpu.dot_dimension_numbers<[2], [1], [1], [2], [0, 0, 0, 1, 1, 2], [0], [0]>} : vector<2x8x8xf32>, vector<2x8x8xf32>, vector<2x8x8xf32> -> vector<2x8x8xf32>
    "tpu.trace_stop"() : () -> ()
    %94 = tpu.concatenate %36, %55, %74, %93 in 2 : vector<2x8x8xf32>, vector<2x8x8xf32>, vector<2x8x8xf32>, vector<2x8x8xf32> -> vector<2x8x32xf32>
    %95 = vector.shape_cast %94 : vector<2x8x32xf32> to vector<16x32xf32>
    %c0_31 = arith.constant 0 : index
    %c0_32 = arith.constant 0 : index
    %c0_33 = arith.constant 0 : index
    %96 = vector.load %arg7[%c0_31, %c0_32, %c0_33] : memref<1x32x32xf32, #tpu.memory_space<vmem>>, vector<1x32x32xf32>
    %97 = vector.shape_cast %96 : vector<1x32x32xf32> to vector<32x32xf32>
    %cst_34 = arith.constant dense<0.000000e+00> : vector<16x32xf32>
    %98 = tpu.matmul %95, %97, %cst_34 {dimension_numbers = #tpu.dot_dimension_numbers<[1], [0], [0], [1], [0, 0, 1, 1], [], []>} : vector<16x32xf32>, vector<32x32xf32>, vector<16x32xf32> -> vector<16x32xf32>
    %c0_35 = arith.constant 0 : index
    %c0_36 = arith.constant 0 : index
    %c0_37 = arith.constant 0 : index
    %99 = vector.load %arg8[%c0_35, %c0_36, %c0_37] : memref<1x1x32xf32, #tpu.memory_space<vmem>>, vector<1x1x32xf32>
    %100 = vector.shape_cast %99 : vector<1x1x32xf32> to vector<1x32xf32>
    %101 = vector.broadcast %100 : vector<1x32xf32> to vector<16x32xf32>
    %102 = arith.addf %98, %101 : vector<16x32xf32>
    %103 = arith.addf %3, %102 : vector<16x32xf32>
    %c0_38 = arith.constant 0 : index
    %c0_39 = arith.constant 0 : index
    %c0_40 = arith.constant 0 : index
    %104 = vector.load %arg9[%c0_38, %c0_39, %c0_40] : memref<1x1x32xf32, #tpu.memory_space<vmem>>, vector<1x1x32xf32>
    %105 = vector.shape_cast %104 : vector<1x1x32xf32> to vector<1x32xf32>
    %c0_41 = arith.constant 0 : index
    %c0_42 = arith.constant 0 : index
    %c0_43 = arith.constant 0 : index
    %106 = vector.load %arg10[%c0_41, %c0_42, %c0_43] : memref<1x1x32xf32, #tpu.memory_space<vmem>>, vector<1x1x32xf32>
    %107 = vector.shape_cast %106 : vector<1x1x32xf32> to vector<1x32xf32>
    %cst_44 = arith.constant dense<0.000000e+00> : vector<16xf32>
    %108 = vector.multi_reduction <add>, %103, %cst_44 [1] : vector<16x32xf32> to vector<16xf32>
    %109 = vector.shape_cast %108 : vector<16xf32> to vector<16x1xf32>
    %cst_45 = arith.constant 3.200000e+01 : f32
    %110 = vector.broadcast %cst_45 : f32 to vector<16x1xf32>
    %111 = arith.divf %109, %110 : vector<16x1xf32>
    %112 = vector.broadcast %111 : vector<16x1xf32> to vector<16x32xf32>
    %113 = arith.subf %103, %112 : vector<16x32xf32>
    %114 = arith.mulf %113, %113 : vector<16x32xf32>
    %cst_46 = arith.constant dense<0.000000e+00> : vector<16xf32>
    %115 = vector.multi_reduction <add>, %114, %cst_46 [1] : vector<16x32xf32> to vector<16xf32>
    %116 = vector.shape_cast %115 : vector<16xf32> to vector<16x1xf32>
    %cst_47 = arith.constant 3.200000e+01 : f32
    %117 = vector.broadcast %cst_47 : f32 to vector<16x1xf32>
    %118 = arith.divf %116, %117 : vector<16x1xf32>
    %119 = vector.broadcast %111 : vector<16x1xf32> to vector<16x32xf32>
    %120 = arith.subf %103, %119 : vector<16x32xf32>
    %cst_48 = arith.constant 9.99999996E-13 : f32
    %121 = vector.broadcast %cst_48 : f32 to vector<16x1xf32>
    %122 = arith.addf %118, %121 : vector<16x1xf32>
    %123 = math.rsqrt %122 : vector<16x1xf32>
    %124 = vector.broadcast %123 : vector<16x1xf32> to vector<16x32xf32>
    %125 = arith.mulf %120, %124 : vector<16x32xf32>
    %126 = vector.broadcast %105 : vector<1x32xf32> to vector<16x32xf32>
    %127 = arith.mulf %125, %126 : vector<16x32xf32>
    %128 = vector.broadcast %107 : vector<1x32xf32> to vector<16x32xf32>
    %129 = arith.addf %127, %128 : vector<16x32xf32>
    %c0_49 = arith.constant 0 : index
    %c0_50 = arith.constant 0 : index
    %c0_51 = arith.constant 0 : index
    %130 = vector.load %arg11[%c0_49, %c0_50, %c0_51] : memref<1x32x128xf32, #tpu.memory_space<vmem>>, vector<1x32x128xf32>
    %131 = vector.shape_cast %130 : vector<1x32x128xf32> to vector<32x128xf32>
    %cst_52 = arith.constant dense<0.000000e+00> : vector<16x128xf32>
    %132 = tpu.matmul %129, %131, %cst_52 {dimension_numbers = #tpu.dot_dimension_numbers<[1], [0], [0], [1], [0, 0, 1, 1], [], []>} : vector<16x32xf32>, vector<32x128xf32>, vector<16x128xf32> -> vector<16x128xf32>
    %c0_53 = arith.constant 0 : index
    %c0_54 = arith.constant 0 : index
    %c0_55 = arith.constant 0 : index
    %133 = vector.load %arg12[%c0_53, %c0_54, %c0_55] : memref<1x1x128xf32, #tpu.memory_space<vmem>>, vector<1x1x128xf32>
    %134 = vector.shape_cast %133 : vector<1x1x128xf32> to vector<1x128xf32>
    %135 = vector.broadcast %134 : vector<1x128xf32> to vector<16x128xf32>
    %136 = arith.addf %132, %135 : vector<16x128xf32>
    %cst_56 = arith.constant 5.000000e-01 : f32
    %137 = vector.broadcast %cst_56 : f32 to vector<16x128xf32>
    %138 = arith.mulf %137, %136 : vector<16x128xf32>
    %cst_57 = arith.constant 1.41421354 : f32
    %139 = vector.broadcast %cst_57 : f32 to vector<16x128xf32>
    %140 = arith.divf %136, %139 : vector<16x128xf32>
    %141 = math.erf %140 : vector<16x128xf32>
    %cst_58 = arith.constant 1.000000e+00 : f32
    %142 = vector.broadcast %cst_58 : f32 to vector<16x128xf32>
    %143 = arith.addf %142, %141 : vector<16x128xf32>
    %144 = arith.mulf %138, %143 : vector<16x128xf32>
    %c0_59 = arith.constant 0 : index
    %c0_60 = arith.constant 0 : index
    %c0_61 = arith.constant 0 : index
    %145 = vector.load %arg13[%c0_59, %c0_60, %c0_61] : memref<1x128x32xf32, #tpu.memory_space<vmem>>, vector<1x128x32xf32>
    %146 = vector.shape_cast %145 : vector<1x128x32xf32> to vector<128x32xf32>
    %cst_62 = arith.constant dense<0.000000e+00> : vector<16x32xf32>
    %147 = tpu.matmul %144, %146, %cst_62 {dimension_numbers = #tpu.dot_dimension_numbers<[1], [0], [0], [1], [0, 0, 1, 1], [], []>} : vector<16x128xf32>, vector<128x32xf32>, vector<16x32xf32> -> vector<16x32xf32>
    %c0_63 = arith.constant 0 : index
    %c0_64 = arith.constant 0 : index
    %c0_65 = arith.constant 0 : index
    %148 = vector.load %arg14[%c0_63, %c0_64, %c0_65] : memref<1x1x32xf32, #tpu.memory_space<vmem>>, vector<1x1x32xf32>
    %149 = vector.shape_cast %148 : vector<1x1x32xf32> to vector<1x32xf32>
    %150 = vector.broadcast %149 : vector<1x32xf32> to vector<16x32xf32>
    %151 = arith.addf %147, %150 : vector<16x32xf32>
    %152 = arith.addf %129, %151 : vector<16x32xf32>
    %c0_66 = arith.constant 0 : index
    %c0_67 = arith.constant 0 : index
    %c0_68 = arith.constant 0 : index
    %153 = vector.load %arg15[%c0_66, %c0_67, %c0_68] : memref<1x1x32xf32, #tpu.memory_space<vmem>>, vector<1x1x32xf32>
    %154 = vector.shape_cast %153 : vector<1x1x32xf32> to vector<1x32xf32>
    %c0_69 = arith.constant 0 : index
    %c0_70 = arith.constant 0 : index
    %c0_71 = arith.constant 0 : index
    %155 = vector.load %arg16[%c0_69, %c0_70, %c0_71] : memref<1x1x32xf32, #tpu.memory_space<vmem>>, vector<1x1x32xf32>
    %156 = vector.shape_cast %155 : vector<1x1x32xf32> to vector<1x32xf32>
    %cst_72 = arith.constant dense<0.000000e+00> : vector<16xf32>
    %157 = vector.multi_reduction <add>, %152, %cst_72 [1] : vector<16x32xf32> to vector<16xf32>
    %158 = vector.shape_cast %157 : vector<16xf32> to vector<16x1xf32>
    %cst_73 = arith.constant 3.200000e+01 : f32
    %159 = vector.broadcast %cst_73 : f32 to vector<16x1xf32>
    %160 = arith.divf %158, %159 : vector<16x1xf32>
    %161 = vector.broadcast %160 : vector<16x1xf32> to vector<16x32xf32>
    %162 = arith.subf %152, %161 : vector<16x32xf32>
    %163 = arith.mulf %162, %162 : vector<16x32xf32>
    %cst_74 = arith.constant dense<0.000000e+00> : vector<16xf32>
    %164 = vector.multi_reduction <add>, %163, %cst_74 [1] : vector<16x32xf32> to vector<16xf32>
    %165 = vector.shape_cast %164 : vector<16xf32> to vector<16x1xf32>
    %cst_75 = arith.constant 3.200000e+01 : f32
    %166 = vector.broadcast %cst_75 : f32 to vector<16x1xf32>
    %167 = arith.divf %165, %166 : vector<16x1xf32>
    %168 = vector.broadcast %160 : vector<16x1xf32> to vector<16x32xf32>
    %169 = arith.subf %152, %168 : vector<16x32xf32>
    %cst_76 = arith.constant 9.99999996E-13 : f32
    %170 = vector.broadcast %cst_76 : f32 to vector<16x1xf32>
    %171 = arith.addf %167, %170 : vector<16x1xf32>
    %172 = math.rsqrt %171 : vector<16x1xf32>
    %173 = vector.broadcast %172 : vector<16x1xf32> to vector<16x32xf32>
    %174 = arith.mulf %169, %173 : vector<16x32xf32>
    %175 = vector.broadcast %154 : vector<1x32xf32> to vector<16x32xf32>
    %176 = arith.mulf %174, %175 : vector<16x32xf32>
    %177 = vector.broadcast %156 : vector<1x32xf32> to vector<16x32xf32>
    %178 = arith.addf %176, %177 : vector<16x32xf32>
    %c0_77 = arith.constant 0 : index
    %c0_78 = arith.constant 0 : index
    %179 = vector.load %arg20[%c0_77, %c0_78] : memref<16x32xf32, #tpu.memory_space<vmem>>, vector<16x32xf32>
    tpu.vector_store %arg20[%c0_77, %c0_78], %178 {strides = array<i32>} : memref<16x32xf32, #tpu.memory_space<vmem>>, vector<16x32xf32>,
    %c1_i32 = arith.constant 1 : i32
    %180 = arith.cmpi eq, %arg0, %c1_i32 : i32
    %181 = arith.extui %180 : i1 to i32
    %c0_i32_79 = arith.constant 0 : i32
    %182 = arith.cmpi ne, %181, %c0_i32_79 : i32
    scf.if %182 {
      %183 = vector.extract_strided_slice %178 {offsets = [0, 0], sizes = [1, 32], strides = [1, 1]} : vector<16x32xf32> to vector<1x32xf32>
      %184 = vector.extract_strided_slice %178 {offsets = [8, 0], sizes = [1, 32], strides = [1, 1]} : vector<16x32xf32> to vector<1x32xf32>
      %185 = tpu.concatenate %183, %184 in 0 : vector<1x32xf32>, vector<1x32xf32> -> vector<2x32xf32>
      %c0_80 = arith.constant 0 : index
      %c0_81 = arith.constant 0 : index
      %186 = vector.load %arg17[%c0_80, %c0_81] : memref<32x3xf32, #tpu.memory_space<vmem>>, vector<32x3xf32>
      %cst_82 = arith.constant dense<0.000000e+00> : vector<2x3xf32>
      %187 = tpu.matmul %185, %186, %cst_82 {dimension_numbers = #tpu.dot_dimension_numbers<[1], [0], [0], [1], [0, 0, 1, 1], [], []>} : vector<2x32xf32>, vector<32x3xf32>, vector<2x3xf32> -> vector<2x3xf32>
      %c0_83 = arith.constant 0 : index
      %c0_84 = arith.constant 0 : index
      %188 = vector.load %arg18[%c0_83, %c0_84] : memref<1x3xf32, #tpu.memory_space<vmem>>, vector<1x3xf32>
      %189 = vector.broadcast %188 : vector<1x3xf32> to vector<2x3xf32>
      %190 = arith.addf %187, %189 : vector<2x3xf32>
      %cst_85 = arith.constant dense<0xFF800000> : vector<2xf32>
      %191 = vector.multi_reduction <maximumf>, %190, %cst_85 [1] : vector<2x3xf32> to vector<2xf32>
      %192 = vector.shape_cast %191 : vector<2xf32> to vector<2x1xf32>
      %193 = vector.broadcast %192 : vector<2x1xf32> to vector<2x3xf32>
      %194 = arith.subf %190, %193 : vector<2x3xf32>
      %195 = math.exp %194 : vector<2x3xf32>
      %cst_86 = arith.constant dense<0.000000e+00> : vector<2xf32>
      %196 = vector.multi_reduction <add>, %195, %cst_86 [1] : vector<2x3xf32> to vector<2xf32>
      %197 = vector.shape_cast %196 : vector<2xf32> to vector<2x1xf32>
      %198 = vector.broadcast %197 : vector<2x1xf32> to vector<2x3xf32>
      %199 = arith.divf %195, %198 : vector<2x3xf32>
      %c0_87 = arith.constant 0 : index
      %c0_88 = arith.constant 0 : index
      %200 = vector.load %arg19[%c0_87, %c0_88] : memref<2x3xf32, #tpu.memory_space<vmem>>, vector<2x3xf32>
      tpu.vector_store %arg19[%c0_87, %c0_88], %199 {strides = array<i32>} : memref<2x3xf32, #tpu.memory_space<vmem>>, vector<2x3xf32>,
    } else {
    }
    return
  }
  func.func @transform_0(%arg0: i32) -> (i32, i32) {
    %c0_i32 = arith.constant 0 : i32
    %c0_i32_0 = arith.constant 0 : i32
    %c0_i32_1 = arith.constant 0 : i32
    return %c0_i32, %c0_i32_0 : i32, i32
  }
  func.func @transform_1(%arg0: i32) -> (i32, i32, i32) {
    %c0_i32 = arith.constant 0 : i32
    %c0_i32_0 = arith.constant 0 : i32
    %c0_i32_1 = arith.constant 0 : i32
    %c0_i32_2 = arith.constant 0 : i32
    return %c0_i32, %c0_i32_0, %c0_i32_1 : i32, i32, i32
  }
  func.func @transform_2(%arg0: i32) -> (i32, i32) {
    %c0_i32 = arith.constant 0 : i32
    %c0_i32_0 = arith.constant 0 : i32
    %c0_i32_1 = arith.constant 0 : i32
    return %c0_i32, %c0_i32_0 : i32, i32
  }
  func.func @transform_3(%arg0: i32) -> (i32, i32) {
    %c0_i32 = arith.constant 0 : i32
    %c0_i32_0 = arith.constant 0 : i32
    %c0_i32_1 = arith.constant 0 : i32
    return %c0_i32, %c0_i32_0 : i32, i32
  }
  func.func @transform_4(%arg0: i32) -> (i32, i32, i32) {
    %c0_i32 = arith.constant 0 : i32
    %c0_i32_0 = arith.constant 0 : i32
    %c0_i32_1 = arith.constant 0 : i32
    return %arg0, %c0_i32, %c0_i32_0 : i32, i32, i32
  }
  func.func @transform_5(%arg0: i32) -> (i32, i32, i32) {
    %c0_i32 = arith.constant 0 : i32
    %c0_i32_0 = arith.constant 0 : i32
    %c0_i32_1 = arith.constant 0 : i32
    return %arg0, %c0_i32, %c0_i32_0 : i32, i32, i32
  }
  func.func @transform_6(%arg0: i32) -> (i32, i32, i32) {
    %c0_i32 = arith.constant 0 : i32
    %c0_i32_0 = arith.constant 0 : i32
    %c0_i32_1 = arith.constant 0 : i32
    return %arg0, %c0_i32, %c0_i32_0 : i32, i32, i32
  }
  func.func @transform_7(%arg0: i32) -> (i32, i32, i32) {
    %c0_i32 = arith.constant 0 : i32
    %c0_i32_0 = arith.constant 0 : i32
    %c0_i32_1 = arith.constant 0 : i32
    return %arg0, %c0_i32, %c0_i32_0 : i32, i32, i32
  }
  func.func @transform_8(%arg0: i32) -> (i32, i32, i32) {
    %c0_i32 = arith.constant 0 : i32
    %c0_i32_0 = arith.constant 0 : i32
    %c0_i32_1 = arith.constant 0 : i32
    return %arg0, %c0_i32, %c0_i32_0 : i32, i32, i32
  }
  func.func @transform_9(%arg0: i32) -> (i32, i32, i32) {
    %c0_i32 = arith.constant 0 : i32
    %c0_i32_0 = arith.constant 0 : i32
    %c0_i32_1 = arith.constant 0 : i32
    return %arg0, %c0_i32, %c0_i32_0 : i32, i32, i32
  }
  func.func @transform_10(%arg0: i32) -> (i32, i32, i32) {
    %c0_i32 = arith.constant 0 : i32
    %c0_i32_0 = arith.constant 0 : i32
    %c0_i32_1 = arith.constant 0 : i32
    return %arg0, %c0_i32, %c0_i32_0 : i32, i32, i32
  }
  func.func @transform_11(%arg0: i32) -> (i32, i32, i32) {
    %c0_i32 = arith.constant 0 : i32
    %c0_i32_0 = arith.constant 0 : i32
    %c0_i32_1 = arith.constant 0 : i32
    return %arg0, %c0_i32, %c0_i32_0 : i32, i32, i32
  }
  func.func @transform_12(%arg0: i32) -> (i32, i32, i32) {
    %c0_i32 = arith.constant 0 : i32
    %c0_i32_0 = arith.constant 0 : i32
    %c0_i32_1 = arith.constant 0 : i32
    return %arg0, %c0_i32, %c0_i32_0 : i32, i32, i32
  }
  func.func @transform_13(%arg0: i32) -> (i32, i32, i32) {
    %c0_i32 = arith.constant 0 : i32
    %c0_i32_0 = arith.constant 0 : i32
    %c0_i32_1 = arith.constant 0 : i32
    return %arg0, %c0_i32, %c0_i32_0 : i32, i32, i32
  }
  func.func @transform_14(%arg0: i32) -> (i32, i32, i32) {
    %c0_i32 = arith.constant 0 : i32
    %c0_i32_0 = arith.constant 0 : i32
    %c0_i32_1 = arith.constant 0 : i32
    return %arg0, %c0_i32, %c0_i32_0 : i32, i32, i32
  }
  func.func @transform_15(%arg0: i32) -> (i32, i32, i32) {
    %c0_i32 = arith.constant 0 : i32
    %c0_i32_0 = arith.constant 0 : i32
    %c0_i32_1 = arith.constant 0 : i32
    return %arg0, %c0_i32, %c0_i32_0 : i32, i32, i32
  }
  func.func @transform_16(%arg0: i32) -> (i32, i32) {
    %c0_i32 = arith.constant 0 : i32
    %c0_i32_0 = arith.constant 0 : i32
    %c0_i32_1 = arith.constant 0 : i32
    return %c0_i32, %c0_i32_0 : i32, i32
  }
  func.func @transform_17(%arg0: i32) -> (i32, i32) {
    %c0_i32 = arith.constant 0 : i32
    %c0_i32_0 = arith.constant 0 : i32
    %c0_i32_1 = arith.constant 0 : i32
    return %c0_i32, %c0_i32_0 : i32, i32
  }
  func.func @transform_18(%arg0: i32) -> (i32, i32) {
    %c0_i32 = arith.constant 0 : i32
    %c0_i32_0 = arith.constant 0 : i32
    %c0_i32_1 = arith.constant 0 : i32
    return %c0_i32, %c0_i32_0 : i32, i32
  }
}

</mosaic_0001>

<bundles_post_ra>
// kernel: bert_classifier_forward.1
= control target key start
LH: loop header
LB: loop body
LE: loop exit
PB: predicated region body
PF: predicated region fallthrough
CT: control target
= control target key end

     0   :  { %s3884_s0 = inlined_call_operand.vmem [shape: f32[16,32], index: 0, kind: input, shape index: {}]   ;;  %s3885_s1 = inlined_call_operand.vmem [shape: f32[2,1,8], index: 1, kind: input, shape index: {}]   ;;  %s3886_s2 = inlined_call_operand.vmem [shape: f32[1,32], index: 2, kind: input, shape index: {}]   ;;  %s3887_s3 = inlined_call_operand.vmem [shape: f32[1,32], index: 3, kind: input, shape index: {}]   ;;  %s3888_s4 = inlined_call_operand.vmem [shape: f32[2,32,96], index: 4, kind: input, shape index: {}]   ;;  %s3889_s5 = inlined_call_operand.vmem [shape: f32[2,1,96], index: 5, kind: input, shape index: {}]   ;;  %s3890_s6 = inlined_call_operand.vmem [shape: f32[2,32,32], index: 6, kind: input, shape index: {}]   ;;  %s3891_s7 = inlined_call_operand.vmem [shape: f32[2,1,32], index: 7, kind: input, shape index: {}]   ;;  %s3892_s8 = inlined_call_operand.vmem [shape: f32[2,1,32], index: 8, kind: input, shape index: {}]   ;;  %s3893_s9 = inlined_call_operand.vmem [shape: f32[2,1,32], index: 9, kind: input, shape index: {}]   ;;  %s3894_s10 = inlined_call_operand.vmem [shape: f32[2,32,128], index: 10, kind: input, shape index: {}]   ;;  %s3895_s11 = inlined_call_operand.vmem [shape: f32[2,1,128], index: 11, kind: input, shape index: {}]   ;;  %s3896_s12 = inlined_call_operand.vmem [shape: f32[2,128,32], index: 12, kind: input, shape index: {}]   ;;  %s3897_s13 = inlined_call_operand.vmem [shape: f32[2,1,32], index: 13, kind: input, shape index: {}]   ;;  %s3898_s14 = inlined_call_operand.vmem [shape: f32[2,1,32], index: 14, kind: input, shape index: {}]   ;;  %s3899_s15 = inlined_call_operand.vmem [shape: f32[2,1,32], index: 15, kind: input, shape index: {}]   ;;  %s3900_s16 = inlined_call_operand.vmem [shape: f32[32,3], index: 16, kind: input, shape index: {}]   ;;  %s3901_s17 = inlined_call_operand.vmem [shape: f32[1,3], index: 17, kind: input, shape index: {}]   ;;  %s3902_s18 = inlined_call_operand.hbm [shape: f32[2,3], index: 18, kind: output, shape index: {}]  }
   0x1   :  { %3909 = sst [smem:[#allocation8_spill]] %s3884_s0 }
   0x2   :  { %3910 = sst [smem:[#allocation9_spill]] %s3885_s1 }
   0x3   :  { %3911 = sst [smem:[#allocation10_spill]] %s3886_s2 }
   0x4   :  { %3912 = sst [smem:[#allocation11_spill]] %s3888_s4 }
   0x5   :  { %3913 = sst [smem:[#allocation12_spill]] %s3890_s6 }
   0x6   :  { %3914 = sst [smem:[#allocation13_spill]] %s3900_s16 }
   0x7   :  { %3915 = sst [smem:[#allocation14_spill]] %s3901_s17 }
   0x8   :  { %3916 = sst [smem:[#allocation15_spill]] %s3902_s18 }
   0x9   :  { %23 = vsyncpa [#allocation4], 0  ;;  %s3511_s27 = smov 0  }
   0xa LB: > { %3917 = sst [smem:[#allocation6_spill]] %s3394_s27  ;;  %s3517_s28 = sadd.s32 4294967295, %s3394_s27   ;;  %s3394_s27 = sphi %s3511_s27, %s29_s27  }
   0xb   : > { %p2915_p0 = scmp.ge.s32.totalorder %s3394_s27, 1  ;;  %p602_p1 = scmp.lt.s32.totalorder %s3394_s27, 3 }
   0xd   : > { %p603_p2 = pnand %p2915_p0, %p602_p1 }
   0xf   : > { %606 = sbr.rel (%p603_p2) target bundleno = 5017 (0x1399), region = 92 }
  0x16   : > { %p690_p3 = scmp.lt.s32.totalorder %s3517_s28, 1  ;;  %s3918_s4 = sld [smem:[#allocation11_spill]] }
  0x17   : > { %s3919_s6 = sld [smem:[#allocation12_spill]]  ;;  %p2924_p4 = scmp.ne.s32.totalorder %s3517_s28, 0 }
  0x18   : > { %s3523_s29 = scalar_select %p690_p3, %s3517_s28, 1 }
  0x19   : > { %737 = sbr.rel (%p2924_p4) target bundleno = 350 (0x15e), region = 96  ;;  %s3921_s25 = sld [smem:[#allocation8_spill]] (!%p2924_p4)  ;;  %vm742_vm0 = vcmask (!%p2924_p4), 261120   ;;  %v2926_v23 = vld [vmem:[%s3887_s3] ss:$0 sm:$0xff] (!%p2924_p4) }
  0x1a   : > { %s2974_s30 = sshll.u32 %s3523_s29, 5  ;;  %s727_s0 = scalar_lea.vmem %s3897_s13, %s3523_s29 }
  0x1b   : > { %s730_s20 = scalar_lea.vmem %s3898_s14, %s3523_s29  ;;  %s733_s16 = scalar_lea.vmem %s3899_s15, %s3523_s29 }
  0x1c   : > { %s3533_s22 = scalar_lea.vmem %s3918_s4, %s2974_s30  ;;  %s3555_s4 = scalar_lea.vmem %s3894_s10, %s2974_s30 }
  0x1d   : > { %s3538_s24 = scalar_lea.vmem %s3919_s6, %s2974_s30  ;;  %s719_s6 = scalar_lea.vmem %s3895_s11, %s3523_s29 }
  0x1e   : > { %3920 = sst [smem:[#allocation7_spill]] %s3538_s24  ;;  %s2977_s24 = sshll.u32 %s3523_s29, 7 }
  0x1f   : > { %s3565_s27 = scalar_lea.vmem %s3896_s12, %s2977_s24  ;;  %v738_v0 = vld [vmem:[%s3921_s25] sm:$0xff] (!%p2924_p4)  ;;  %v739_v1 = vld [vmem:[%s3921_s25 + $0x8] sm:$0xff] (!%p2924_p4)  ;;  %s3922_s18 = sld [smem:[#allocation10_spill]] (!%p2924_p4) }
  0x20   : > { %v743_v2 = vsel %vm742_vm0, %v738_v0, 0.0  ;;  %v746_v3 = vsel %vm742_vm0, %v739_v1, 0.0 }
  0x21   : > { %744 = vadd.xlane.f32.xlu0 %v743_v2 }
  0x25   : > { %747 = vadd.xlane.f32.xlu0 %v746_v3  ;;  %v2925_v21 = vld [vmem:[%s3922_s18] ss:$0 sm:$0xff] }
  0xae   : > { %v745_v4 = vpop.xlane.xlu0 %744 }
  0xaf   : > { %v750_v5 = vmul.f32 0.03125, %v745_v4 }
  0xb1   : > { %v752_v6 = vsub.f32 %v738_v0, %v750_v5 }
  0xb2   : > { %v748_v7 = vpop.xlane.xlu0 %747 }
  0xb3   : > { %v751_v8 = vmul.f32 0.03125, %v748_v7  ;;  %v754_v9 = vmul.f32 %v752_v6, %v752_v6 }
  0xb5   : > { %v753_v10 = vsub.f32 %v739_v1, %v751_v8  ;;  %v756_v11 = vsel %vm742_vm0, %v754_v9, 0.0 }
  0xb6   : > { %757 = vadd.xlane.f32.xlu1 %v756_v11 }
  0xb7   : > { %v755_v12 = vmul.f32 %v753_v10, %v753_v10 }
  0xb9   : > { %v759_v13 = vsel %vm742_vm0, %v755_v12, 0.0 }
  0xba   : > { %760 = vadd.xlane.f32.xlu1 %v759_v13 }
 0x143   : > { %v758_v14 = vpop.xlane.xlu1 %757 }
 0x144   : > { %v762_v15 = vmul.f32 0.03125, %v758_v14 }
 0x146   : > { %v764_v16 = vadd.f32 1e-12, %v762_v15 }
 0x147   : > { %v761_v17 = vpop.xlane.xlu1 %760 }
 0x148   : > { %3306 = vrsqrt.f32 %v764_v16  ;;  %v763_v18 = vmul.f32 0.03125, %v761_v17 }
 0x14a   : > { %v765_v19 = vadd.f32 1e-12, %v763_v18 }
 0x14c   : > { %3308 = vrsqrt.f32 %v765_v19 }
 0x152   : > { %v3307_v20 = vpop.eup %3306 }
 0x153   : > { %v768_v22 = vmul.f32 %v3307_v20, %v752_v6 }
 0x155   : > { %v776_v24 = vmul.f32 %v2925_v21, %v768_v22 }
 0x156   : > { %v3309_v25 = vpop.eup %3308 }
 0x157   : > { %v784_v26 = vadd.f32 %v2926_v23, %v776_v24  ;;  %v769_v27 = vmul.f32 %v3309_v25, %v753_v10 }
 0x159   : > { %786 = vst.msk [vmem:[#allocation2] sm:$0xff] %vm742_vm0, %v784_v26  ;;  %v777_v28 = vmul.f32 %v2925_v21, %v769_v27 }
 0x15b   : > { %v785_v29 = vadd.f32 %v2926_v23, %v777_v28 }
 0x15d   : > { %787 = vst.msk [vmem:[#allocation2 + $0x8] sm:$0xff] %vm742_vm0, %v785_v29 }
 0x15e PF: > { %v790_v30 = vld [vmem:[%s3533_s22] sm:$0xff]  ;;  %v791_v31 = vld [vmem:[%s3533_s22 + $0x8] sm:$0xff]  ;;  %v792_v32 = vld [vmem:[%s3533_s22 + $0x10] sm:$0xff]  ;;  %vm801_vm1 = vcmask 261120   ;;  %v3396_v38 = vmov 0.0   ;;  %vm3397_vm2 = vmmov 0   ;;  %s3923_s2 = scalar_lea.vmem %s3889_s5, %s3523_s29 }
 0x15f   : > { %v3210_v33 = vpack.c.bf16 %v791_v31, %v790_v30  ;;  %v793_v34 = vld [vmem:[%s3533_s22 + $0x18] sm:$0xff]  ;;  %3072 = vmatprep.subr.mxu0 %v3396_v38  ;;  %3074 = vmatprep.mubr.msk.f32.mxu0 %vm3397_vm2, %v3396_v38  ;;  %v2927_v39 = vld [vmem:[%s3923_s2] ss:$0 sm:$0xff]  ;;  %s3398_s23 = smov 96   ;;  %vm888_vm3 = vcmask 64512   ;;  %s3924_s1 = sld [smem:[#allocation9_spill]] }
 0x160   : > { %v3602_v35 = vld [vmem:[#allocation2] sm:$0xff]  ;;  %v3214_v36 = vpack.c.bf16 %v793_v34, %v792_v32  ;;  %s3399_s19 = smov 64   ;;  %s3400_s30 = smov 88   ;;  %vm2261_vm4 = vcmask 195584   ;;  %vm2258_vm5 = vcmask 130048  }
 0x161   : > { %3059 = vmatprep.mubr.msk.f32.mxu1 %vm801_vm1, %v3602_v35  ;;  %3211 = vmatprep.subr.bf16.mxu1 %v3210_v33  ;;  %s3401_s22 = smov 120   ;;  %s3402_s21 = smov 56  }
 0x162   : > { %3213 = vmatpush3.bf16.msra.mxu1 %v3210_v33  ;;  %s3403_s2 = smov 80   ;;  %s3405_s24 = smov 48  }
 0x163   : > { %3215 = vmatprep.subr.bf16.mxu1 %v3214_v36  ;;  %s3406_s26 = smov 72   ;;  %s3407_s17 = smov 104  }
 0x164   : > { %v3606_v37 = vld [vmem:[#allocation2 + $0x8] sm:$0xff]  ;;  %s3408_s18 = smov 40   ;;  %p2967_p5 = scmp.ne.s32.totalorder %s3517_s28, 1 }
 0x165   : > { %v3642_v47 = vld [vmem:[%s3924_s1] ss:$0 sm:$0xff]  ;;  %v3648_v52 = vld [vmem:[%s3924_s1 + $0x1] ss:$0 sm:$0xff]  ;;  %vm3413_vm6 = vmmov (!%p2967_p5), 0   ;;  %vm2659_vm7 = vcmask (!%p2967_p5), 1040384  }
 0x166   : > { %3217 = vmatpush3.bf16.msra.mxu1 %v3214_v36  ;;  %vm2745_vm8 = vcmask (!%p2967_p5), 17408  }
 0x167   : > { %3062 = vmatprep.subr.mxu1 %v3396_v38 }
 0x169   : > { %3060 = vmatmul.mubr.msk.f32.vlgmr.msra.gmra.mrb[0].mxu1 %vm801_vm1, %v3606_v37 }
 0x16a   : > { %3064 = vmatprep.mubr.msk.f32.mxu1 %vm3397_vm2, %v3396_v38 }
 0x23c   : > { %v3061_v40 = vpop.f32.mrb[0].mxu1 }
 0x23d   : > { %v874_v41 = vpop.f32.mrb[1].mxu1  ;;  %v3624_v43 = vadd.f32 %v3061_v40, %v2927_v39 }
 0x23e   : > { %v3621_v42 = vadd.f32 %v2927_v39, %v874_v41 }
 0x240   : > { %886 = vrot.lane.b32.xlu0 %v3621_v42, %s3398_s23 }
 0x244   : > { %964 = vrot.lane.b32.xlu0 %v3624_v43, %s3398_s23  ;;  %s3404_s23 = smov 112  }
 0x2b2   : > { %v887_v44 = vpop.permute.xlu0 %886 }
 0x2b3   : > { %3063 = vmatpush3.xpose.msk.msra.mxu1 %vm888_vm3, %v887_v44 }
 0x2b4   : > { %3067 = vmatprep.subr.mxu1 %v3396_v38 }
 0x2b6   : > { %3065 = vmatmul.mubr.msk.f32.vlgmr.msra.gmra.mrb[2].mxu1 %vm888_vm3, %v3621_v42  ;;  %v965_v45 = vpop.permute.xlu0 %964 }
 0x2b7   : > { %3068 = vmatpush3.xpose.msk.msra.mxu1 %vm888_vm3, %v965_v45  ;;  %3069 = vmatprep.mubr.msk.f32.mxu1 %vm3397_vm2, %v3396_v38 }
 0x2b8   : > { %3077 = vmatprep.subr.mxu1 %v3396_v38 }
 0x2ba   : > { %3070 = vmatmul.mubr.msk.f32.vlgmr.msra.gmra.mrb[4].mxu1 %vm888_vm3, %v3624_v43 }
 0x2bb   : > { %3079 = vmatprep.mubr.msk.f32.mxu1 %vm3397_vm2, %v3396_v38 }
 0x389   : > { %v959_v46 = vpop.f32.mrb[2].mxu1 }
 0x38a   : > { %v1040_v48 = vmul.f32 0.35355338, %v959_v46  ;;  %v3066_v49 = vpop.f32.mrb[3].mxu1 }
 0x38c   : > { %v1054_v50 = vadd.f32 %v3642_v47, %v1040_v48 }
 0x38d   : > { %v1036_v51 = vpop.f32.mrb[4].mxu1 }
 0x38e   : > { %v1041_v53 = vmul.f32 0.35355338, %v1036_v51  ;;  %v3071_v54 = vpop.f32.mrb[5].mxu1  ;;  %v1056_v55 = vsel %vm888_vm3, %v1054_v50, -inf }
 0x38f   : > { %1057 = vmax.xlane.f32.xlu1 %v1056_v55 }
 0x390   : > { %v1055_v56 = vadd.f32 %v3648_v52, %v1041_v53 }
 0x392   : > { %v1059_v57 = vsel %vm888_vm3, %v1055_v56, -inf }
 0x393   : > { %1060 = vmax.xlane.f32.xlu1 %v1059_v57 }
 0x3a4   : > { %1078 = vrot.lane.b32.xlu1 %v3621_v42, %s3399_s19 }
 0x3a8   : > { %1154 = vrot.lane.b32.xlu1 %v3624_v43, %s3399_s19  ;;  %s3409_s19 = smov 8  }
 0x3ac   : > { %1232 = vrot.lane.b32.xlu1 %v3621_v42, %s3400_s30 }
 0x3b0   : > { %1310 = vrot.lane.b32.xlu1 %v3624_v43, %s3400_s30  ;;  %s3410_s30 = smov 16  }
 0x41c   : > { %v1058_v58 = vpop.xlane.xlu1 %1057 }
 0x41d   : > { %v1062_v59 = vsub.f32 %v1054_v50, %v1058_v58 }
 0x41f   : > { %v1064_v60 = vmul.f32 1.442695, %v1062_v59 }
 0x420   : > { %v1061_v61 = vpop.xlane.xlu1 %1060 }
 0x421   : > { %3310 = vpow2.f32 %v1064_v60  ;;  %v1063_v62 = vsub.f32 %v1055_v56, %v1061_v61 }
 0x423   : > { %v1066_v63 = vmul.f32 1.442695, %v1063_v62 }
 0x424   : > { %v1079_v0 = vpop.permute.xlu1 %1078 }
 0x425   : > { %3312 = vpow2.f32 %v1066_v63  ;;  %3073 = vmatpush3.msra.mxu0 %v1079_v0 }
 0x426   : > { %3082 = vmatprep.subr.mxu0 %v3396_v38 }
 0x428   : > { %v1155_v1 = vpop.permute.xlu1 %1154 }
 0x429   : > { %3078 = vmatpush3.msra.mxu1 %v1155_v1 }
 0x42a   : > { %3087 = vmatprep.subr.mxu1 %v3396_v38 }
 0x42b   : > { %v3311_v2 = vpop.eup %3310 }
 0x42c   : > { %v1068_v3 = vsel %vm888_vm3, %v3311_v2, 0.0  ;;  %v1233_v6 = vpop.permute.xlu1 %1232 }
 0x42d   : > { %1069 = vadd.xlane.f32.xlu0 %v1068_v3 }
 0x42f   : > { %v3313_v4 = vpop.eup %3312 }
 0x430   : > { %v1071_v5 = vsel %vm888_vm3, %v3313_v4, 0.0  ;;  %v1311_v7 = vpop.permute.xlu1 %1310 }
 0x431   : > { %1072 = vadd.xlane.f32.xlu1 %v1071_v5 }
 0x442   : > { %1308 = vrot.lane.b32.xlu1 %v3624_v43, %s3401_s22 }
 0x443   : > { %1230 = vrot.lane.b32.xlu0 %v3621_v42, %s3401_s22  ;;  %s3925_s22 = sld [smem:[#allocation7_spill]] }
 0x4ba   : > { %v1070_v8 = vpop.xlane.xlu0 %1069 }
 0x4bb   : > { %3314 = vrcp.f32 %v1070_v8 }
 0x4be   : > { %v1073_v9 = vpop.xlane.xlu1 %1072  ;;  %v1231_v14 = vpop.permute.xlu0 %1230 }
 0x4bf   : > { %3316 = vrcp.f32 %v1073_v9 }
 0x4c2   : > { %v1309_v15 = vpop.permute.xlu1 %1308 }
 0x4c5   : > { %v3315_v10 = vpop.eup %3314 }
 0x4c6   : > { %v1076_v11 = vmul.f32 %v3315_v10, %v3311_v2 }
 0x4c8   : > { %3075 = vmatmul.mubr.msk.f32.vlgmr.msra.gmra.mrb[0].mxu0 %vm888_vm3, %v1076_v11 }
 0x4c9   : > { %v3317_v12 = vpop.eup %3316  ;;  %3083 = vmatpush3.xpose.msk.msra.mxu0 %vm888_vm3, %v1233_v6  ;;  %3084 = vmatprep.mubr.msk.f32.mxu0 %vm3397_vm2, %v3396_v38 }
 0x4ca   : > { %v1077_v13 = vmul.f32 %v3317_v12, %v3313_v4  ;;  %3092 = vmatprep.subr.mxu0 %v3396_v38 }
 0x4cc   : > { %3080 = vmatmul.mubr.msk.f32.vlgmr.msra.gmra.mrb[6].mxu1 %vm888_vm3, %v1077_v13  ;;  %3085 = vmatmul.mubr.msk.f32.vlgmr.msra.gmra.mrb[2].mxu0 %vm888_vm3, %v1231_v14 }
 0x4cd   : > { %3088 = vmatpush3.xpose.msk.msra.mxu1 %vm888_vm3, %v1311_v7  ;;  %3089 = vmatprep.mubr.msk.f32.mxu1 %vm3397_vm2, %v3396_v38 }
 0x4ce   : > { %3097 = vmatprep.subr.mxu1 %v3396_v38  ;;  %3094 = vmatprep.mubr.msk.f32.mxu0 %vm3397_vm2, %v3396_v38 }
 0x4d0   : > { %3090 = vmatmul.mubr.msk.f32.vlgmr.msra.gmra.mrb[8].mxu1 %vm888_vm3, %v1309_v15 }
 0x4d1   : > { %3099 = vmatprep.mubr.msk.f32.mxu1 %vm3397_vm2, %v3396_v38 }
 0x59b   : > { %v3679_v16 = vpop.f32.mrb[0].mxu0 }
 0x59c   : > { %v3076_v17 = vpop.f32.mrb[1].mxu0 }
 0x59f   : > { %v3681_v18 = vpop.f32.mrb[6].mxu1  ;;  %v1304_v19 = vpop.f32.mrb[2].mxu0 }
 0x5a0   : > { %v1386_v20 = vmul.f32 0.35355338, %v1304_v19  ;;  %v3081_v21 = vpop.f32.mrb[7].mxu1  ;;  %v3086_v22 = vpop.f32.mrb[3].mxu0 }
 0x5a2   : > { %v1388_v23 = vadd.f32 %v3642_v47, %v1386_v20 }
 0x5a3   : > { %v1382_v24 = vpop.f32.mrb[8].mxu1 }
 0x5a4   : > { %v1387_v25 = vmul.f32 0.35355338, %v1382_v24  ;;  %v3091_v26 = vpop.f32.mrb[9].mxu1  ;;  %v1390_v27 = vsel %vm888_vm3, %v1388_v23, -inf }
 0x5a5   : > { %1391 = vmax.xlane.f32.xlu1 %v1390_v27 }
 0x5a6   : > { %v1389_v28 = vadd.f32 %v3648_v52, %v1387_v25 }
 0x5a8   : > { %v1393_v29 = vsel %vm888_vm3, %v1389_v28, -inf }
 0x5a9   : > { %1394 = vmax.xlane.f32.xlu0 %v1393_v29 }
 0x5b6   : > { %1412 = vrot.lane.b32.xlu1 %v3621_v42, %s3402_s21 }
 0x5ba   : > { %1566 = vrot.lane.b32.xlu1 %v3621_v42, %s3403_s2 }
 0x5be   : > { %1644 = vrot.lane.b32.xlu1 %v3624_v43, %s3403_s2 }
 0x5bf   : > { %1488 = vrot.lane.b32.xlu0 %v3624_v43, %s3402_s21  ;;  %s3411_s21 = smov 24  }
 0x5c3   : > { %1564 = vrot.lane.b32.xlu0 %v3621_v42, %s3404_s23 }
 0x632   : > { %v1392_v30 = vpop.xlane.xlu1 %1391 }
 0x633   : > { %v1396_v31 = vsub.f32 %v1388_v23, %v1392_v30 }
 0x635   : > { %v1398_v32 = vmul.f32 1.442695, %v1396_v31 }
 0x636   : > { %v1413_v33 = vpop.permute.xlu1 %1412  ;;  %v1395_v34 = vpop.xlane.xlu0 %1394 }
 0x637   : > { %3318 = vpow2.f32 %v1398_v32  ;;  %v1397_v36 = vsub.f32 %v1389_v28, %v1395_v34  ;;  %3093 = vmatpush3.msra.mxu0 %v1413_v33 }
 0x638   : > { %3102 = vmatprep.subr.mxu0 %v3396_v38 }
 0x639   : > { %v1400_v39 = vmul.f32 1.442695, %v1397_v36 }
 0x63a   : > { %v1489_v40 = vpop.permute.xlu0 %1488  ;;  %v1567_v48 = vpop.permute.xlu1 %1566 }
 0x63b   : > { %3320 = vpow2.f32 %v1400_v39  ;;  %3098 = vmatpush3.msra.mxu1 %v1489_v40 }
 0x63c   : > { %3107 = vmatprep.subr.mxu1 %v3396_v38 }
 0x63e   : > { %v1645_v49 = vpop.permute.xlu1 %1644  ;;  %v1565_v57 = vpop.permute.xlu0 %1564 }
 0x641   : > { %v3319_v41 = vpop.eup %3318 }
 0x642   : > { %v1402_v44 = vsel %vm888_vm3, %v3319_v41, 0.0 }
 0x643   : > { %1403 = vadd.xlane.f32.xlu1 %v1402_v44 }
 0x645   : > { %v3321_v45 = vpop.eup %3320 }
 0x646   : > { %v1405_v46 = vsel %vm888_vm3, %v3321_v45, 0.0 }
 0x647   : > { %1406 = vadd.xlane.f32.xlu1 %v1405_v46 }
 0x658   : > { %1642 = vrot.lane.b32.xlu1 %v3624_v43, %s3404_s23 }
 0x6d0   : > { %v1404_v50 = vpop.xlane.xlu1 %1403 }
 0x6d1   : > { %3322 = vrcp.f32 %v1404_v50 }
 0x6d4   : > { %v1407_v51 = vpop.xlane.xlu1 %1406 }
 0x6d5   : > { %3324 = vrcp.f32 %v1407_v51 }
 0x6d8   : > { %v1643_v58 = vpop.permute.xlu1 %1642 }
 0x6db   : > { %v3323_v53 = vpop.eup %3322 }
 0x6dc   : > { %v1410_v54 = vmul.f32 %v3323_v53, %v3319_v41 }
 0x6de   : > { %3095 = vmatmul.mubr.msk.f32.vlgmr.msra.gmra.mrb[4].mxu0 %vm888_vm3, %v1410_v54 }
 0x6df   : > { %v3325_v55 = vpop.eup %3324  ;;  %3103 = vmatpush3.xpose.msk.msra.mxu0 %vm888_vm3, %v1567_v48  ;;  %3104 = vmatprep.mubr.msk.f32.mxu0 %vm3397_vm2, %v3396_v38 }
 0x6e0   : > { %v1411_v56 = vmul.f32 %v3325_v55, %v3321_v45  ;;  %3112 = vmatprep.subr.mxu0 %v3396_v38 }
 0x6e2   : > { %3100 = vmatmul.mubr.msk.f32.vlgmr.msra.gmra.mrb[10].mxu1 %vm888_vm3, %v1411_v56  ;;  %3105 = vmatmul.mubr.msk.f32.vlgmr.msra.gmra.mrb[6].mxu0 %vm888_vm3, %v1565_v57 }
 0x6e3   : > { %3108 = vmatpush3.xpose.msk.msra.mxu1 %vm888_vm3, %v1645_v49  ;;  %3109 = vmatprep.mubr.msk.f32.mxu1 %vm3397_vm2, %v3396_v38 }
 0x6e4   : > { %3117 = vmatprep.subr.mxu1 %v3396_v38  ;;  %3114 = vmatprep.mubr.msk.f32.mxu0 %vm3397_vm2, %v3396_v38 }
 0x6e6   : > { %3110 = vmatmul.mubr.msk.f32.vlgmr.msra.gmra.mrb[12].mxu1 %vm888_vm3, %v1643_v58 }
 0x6e7   : > { %3119 = vmatprep.mubr.msk.f32.mxu1 %vm3397_vm2, %v3396_v38 }
 0x7b1   : > { %v3713_v59 = vpop.f32.mrb[4].mxu0 }
 0x7b2   : > { %v3096_v60 = vpop.f32.mrb[5].mxu0 }
 0x7b5   : > { %v3715_v61 = vpop.f32.mrb[10].mxu1  ;;  %v1638_v62 = vpop.f32.mrb[6].mxu0 }
 0x7b6   : > { %v1720_v63 = vmul.f32 0.35355338, %v1638_v62  ;;  %v3101_v0 = vpop.f32.mrb[11].mxu1  ;;  %v3106_v1 = vpop.f32.mrb[7].mxu0 }
 0x7b8   : > { %v1722_v2 = vadd.f32 %v3642_v47, %v1720_v63 }
 0x7b9   : > { %v1716_v3 = vpop.f32.mrb[12].mxu1 }
 0x7ba   : > { %v1721_v4 = vmul.f32 0.35355338, %v1716_v3  ;;  %v3111_v5 = vpop.f32.mrb[13].mxu1  ;;  %v1724_v6 = vsel %vm888_vm3, %v1722_v2, -inf }
 0x7bb   : > { %1725 = vmax.xlane.f32.xlu0 %v1724_v6  ;;  %v2265_v5 = vld [vmem:[%s3925_s22 + $0x8] sm:$0xff]  ;;  %v2266_v6 = vld [vmem:[%s3925_s22 + $0x10] sm:$0xff] }
 0x7bc   : > { %v1723_v7 = vadd.f32 %v3648_v52, %v1721_v4  ;;  %v2264_v4 = vld [vmem:[%s3925_s22] sm:$0xff] }
 0x7be   : > { %v1727_v8 = vsel %vm888_vm3, %v1723_v7, -inf }
 0x7bf   : > { %1728 = vmax.xlane.f32.xlu1 %v1727_v8 }
 0x7d0   : > { %1746 = vrot.lane.b32.xlu1 %v3621_v42, %s3405_s24 }
 0x7d1   : > { %1822 = vrot.lane.b32.xlu0 %v3624_v43, %s3405_s24  ;;  %s3926_s24 = scalar_lea.vmem %s3891_s7, %s3523_s29 }
 0x7d4   : > { %1900 = vrot.lane.b32.xlu1 %v3621_v42, %s3406_s26 }
 0x7d8   : > { %1978 = vrot.lane.b32.xlu1 %v3624_v43, %s3406_s26  ;;  %s3929_s26 = sld [smem:[#allocation13_spill]] (!%p2967_p5) }
 0x7dc   : > { %1976 = vrot.lane.b32.xlu1 %v3624_v43, %s3407_s17 }
 0x848   : > { %v1726_v9 = vpop.xlane.xlu0 %1725 }
 0x849   : > { %v1730_v10 = vsub.f32 %v1722_v2, %v1726_v9 }
 0x84b   : > { %v1732_v11 = vmul.f32 1.442695, %v1730_v10 }
 0x84c   : > { %v1729_v12 = vpop.xlane.xlu1 %1728  ;;  %v1823_v13 = vpop.permute.xlu0 %1822 }
 0x84d   : > { %3326 = vpow2.f32 %v1732_v11  ;;  %v1731_v14 = vsub.f32 %v1723_v7, %v1729_v12  ;;  %3118 = vmatpush3.msra.mxu1 %v1823_v13  ;;  %v2267_v7 = vld [vmem:[%s3925_s22 + $0x18] sm:$0xff] }
 0x84e   : > { %3127 = vmatprep.subr.mxu1 %v3396_v38  ;;  %v3222_v8 = vpack.c.bf16 %v2267_v7, %v2266_v6 }
 0x84f   : > { %v1734_v15 = vmul.f32 1.442695, %v1731_v14 }
 0x850   : > { %v1747_v17 = vpop.permute.xlu1 %1746 }
 0x851   : > { %3328 = vpow2.f32 %v1734_v15  ;;  %3113 = vmatpush3.msra.mxu0 %v1747_v17 }
 0x852   : > { %3122 = vmatprep.subr.mxu0 %v3396_v38 }
 0x854   : > { %v1901_v25 = vpop.permute.xlu1 %1900 }
 0x857   : > { %v3327_v19 = vpop.eup %3326 }
 0x858   : > { %v1736_v20 = vsel %vm888_vm3, %v3327_v19, 0.0  ;;  %v1979_v29 = vpop.permute.xlu1 %1978 }
 0x859   : > { %1737 = vadd.xlane.f32.xlu0 %v1736_v20 }
 0x85b   : > { %v3329_v21 = vpop.eup %3328 }
 0x85c   : > { %v1739_v22 = vsel %vm888_vm3, %v3329_v21, 0.0  ;;  %v1977_v32 = vpop.permute.xlu1 %1976 }
 0x85d   : > { %1740 = vadd.xlane.f32.xlu0 %v1739_v22 }
 0x873   : > { %1898 = vrot.lane.b32.xlu0 %v3621_v42, %s3407_s17  ;;  %s3927_s17 = scalar_lea.vmem %s3892_s8, %s3523_s29 }
 0x8e6   : > { %v1738_v23 = vpop.xlane.xlu0 %1737 }
 0x8e7   : > { %3330 = vrcp.f32 %v1738_v23 }
 0x8ea   : > { %v1741_v24 = vpop.xlane.xlu0 %1740 }
 0x8eb   : > { %3332 = vrcp.f32 %v1741_v24 }
 0x8ee   : > { %v1899_v31 = vpop.permute.xlu0 %1898 }
 0x8f1   : > { %v3331_v26 = vpop.eup %3330 }
 0x8f2   : > { %v1744_v27 = vmul.f32 %v3331_v26, %v3327_v19 }
 0x8f4   : > { %3115 = vmatmul.mubr.msk.f32.vlgmr.msra.gmra.mrb[8].mxu0 %vm888_vm3, %v1744_v27 }
 0x8f5   : > { %v3333_v28 = vpop.eup %3332  ;;  %3123 = vmatpush3.xpose.msk.msra.mxu0 %vm888_vm3, %v1901_v25  ;;  %3124 = vmatprep.mubr.msk.f32.mxu0 %vm3397_vm2, %v3396_v38 }
 0x8f6   : > { %v1745_v30 = vmul.f32 %v3333_v28, %v3329_v21  ;;  %3132 = vmatprep.subr.mxu0 %v3396_v38 }
 0x8f8   : > { %3120 = vmatmul.mubr.msk.f32.vlgmr.msra.gmra.mrb[14].mxu1 %vm888_vm3, %v1745_v30  ;;  %3125 = vmatmul.mubr.msk.f32.vlgmr.msra.gmra.mrb[10].mxu0 %vm888_vm3, %v1899_v31 }
 0x8f9   : > { %3128 = vmatpush3.xpose.msk.msra.mxu1 %vm888_vm3, %v1979_v29  ;;  %3129 = vmatprep.mubr.msk.f32.mxu1 %vm3397_vm2, %v3396_v38 }
 0x8fa   : > { %3137 = vmatprep.subr.mxu1 %v3396_v38  ;;  %3134 = vmatprep.mubr.msk.f32.mxu0 %vm3397_vm2, %v3396_v38 }
 0x8fc   : > { %3130 = vmatmul.mubr.msk.f32.vlgmr.msra.gmra.mrb[16].mxu1 %vm888_vm3, %v1977_v32 }
 0x8fd   : > { %3139 = vmatprep.mubr.msk.f32.mxu1 %vm3397_vm2, %v3396_v38 }
 0x9c7   : > { %v1818_v33 = vpop.f32.mrb[8].mxu0 }
 0x9c8   : > { %v3116_v34 = vpop.f32.mrb[9].mxu0 }
 0x9cb   : > { %v1894_v36 = vpop.f32.mrb[14].mxu1  ;;  %v1972_v39 = vpop.f32.mrb[10].mxu0 }
 0x9cc   : > { %v2054_v40 = vmul.f32 0.35355338, %v1972_v39  ;;  %v3121_v41 = vpop.f32.mrb[15].mxu1  ;;  %v3126_v44 = vpop.f32.mrb[11].mxu0 }
 0x9ce   : > { %v2056_v45 = vadd.f32 %v3642_v47, %v2054_v40 }
 0x9cf   : > { %v2050_v46 = vpop.f32.mrb[16].mxu1 }
 0x9d0   : > { %v2055_v48 = vmul.f32 0.35355338, %v2050_v46  ;;  %v3131_v49 = vpop.f32.mrb[17].mxu1  ;;  %v2058_v50 = vsel %vm888_vm3, %v2056_v45, -inf }
 0x9d1   : > { %2059 = vmax.xlane.f32.xlu0 %v2058_v50  ;;  %v2404_v49 = vld [vmem:[%s3555_s4 + $0x8] sm:$0xff] }
 0x9d2   : > { %v2057_v51 = vadd.f32 %v3648_v52, %v2055_v48  ;;  %v2403_v48 = vld [vmem:[%s3555_s4] sm:$0xff] }
 0x9d3   : > { %v3226_v50 = vpack.c.bf16 %v2404_v49, %v2403_v48 }
 0x9d4   : > { %v2061_v53 = vsel %vm888_vm3, %v2057_v51, -inf }
 0x9d5   : > { %2062 = vmax.xlane.f32.xlu1 %v2061_v53  ;;  %v2406_v53 = vld [vmem:[%s3555_s4 + $0x18] sm:$0xff] }
 0x9e6   : > { %2080 = vrot.lane.b32.xlu1 %v3621_v42, %s3408_s18 }
 0x9ea   : > { %2234 = vrot.lane.b32.xlu1 %v3713_v59, %s3409_s19 }
 0x9ee   : > { %2236 = vrot.lane.b32.xlu1 %v3715_v61, %s3409_s19 }
 0x9f2   : > { %2244 = vrot.lane.b32.xlu1 %v1894_v36, %s3410_s30 }
 0xa5e   : > { %v2060_v38 = vpop.xlane.xlu0 %2059 }
 0xa5f   : > { %v2064_v47 = vsub.f32 %v2056_v45, %v2060_v38 }
 0xa61   : > { %v2066_v54 = vmul.f32 1.442695, %v2064_v47  ;;  %v2506_v47 = vld [vmem:[%s3565_s27] sm:$0xff] }
 0xa62   : > { %v2063_v55 = vpop.xlane.xlu1 %2062 }
 0xa63   : > { %3334 = vpow2.f32 %v2066_v54  ;;  %v2065_v56 = vsub.f32 %v2057_v51, %v2063_v55  ;;  %v2405_v51 = vld [vmem:[%s3555_s4 + $0x10] sm:$0xff]  ;;  %v2507_v54 = vld [vmem:[%s3565_s27 + $0x8] sm:$0xff] }
 0xa64   : > { %v3230_v38 = vpack.c.bf16 %v2406_v53, %v2405_v51  ;;  %v2508_v55 = vld [vmem:[%s3565_s27 + $0x10] sm:$0xff] }
 0xa65   : > { %v2068_v52 = vmul.f32 1.442695, %v2065_v56  ;;  %v3234_v56 = vpack.c.bf16 %v2507_v54, %v2506_v47 }
 0xa66   : > { %v2081_v57 = vpop.permute.xlu1 %2080 }
 0xa67   : > { %3336 = vpow2.f32 %v2068_v52  ;;  %3133 = vmatpush3.msra.mxu0 %v2081_v57  ;;  %v2509_v52 = vld [vmem:[%s3565_s27 + $0x18] sm:$0xff] }
 0xa68   : > { %v3238_v57 = vpack.c.bf16 %v2509_v52, %v2508_v55  ;;  %3235 = vmatprep.subr.bf16.mxu0 %v3234_v56 }
 0xa6a   : > { %v2235_v13 = vpop.permute.xlu1 %2234 }
 0xa6b   : > { %v2256_v17 = vsel %vm888_vm3, %v3679_v16, %v2235_v13  ;;  %v2956_v16 = vld [vmem:[%s3926_s24] ss:$0 sm:$0xff] }
 0xa6d   : > { %v3335_v58 = vpop.eup %3334 }
 0xa6e   : > { %v2070_v42 = vsel %vm888_vm3, %v3335_v58, 0.0  ;;  %v2237_v14 = vpop.permute.xlu1 %2236 }
 0xa6f   : > { %2071 = vadd.xlane.f32.xlu0 %v2070_v42  ;;  %v2257_v23 = vsel %vm888_vm3, %v3681_v18, %v2237_v14  ;;  %v2511_v42 = vld [vmem:[%s3565_s27 + $0x28] sm:$0xff]  ;;  %v2514_v14 = vld [vmem:[%s3565_s27 + $0x40] sm:$0xff] }
 0xa71   : > { %v3337_v60 = vpop.eup %3336 }
 0xa72   : > { %v2073_v59 = vsel %vm888_vm3, %v3337_v60, 0.0  ;;  %v2245_v19 = vpop.permute.xlu1 %2244 }
 0xa73   : > { %2074 = vadd.xlane.f32.xlu0 %v2073_v59  ;;  %v2260_v24 = vsel %vm2258_vm5, %v2257_v23, %v2245_v19  ;;  %v2516_v19 = vld [vmem:[%s3565_s27 + $0x50] sm:$0xff]  ;;  %v2519_v23 = vld [vmem:[%s3565_s27 + $0x68] sm:$0xff] }
 0xa89   : > { %2156 = vrot.lane.b32.xlu0 %v3624_v43, %s3408_s18  ;;  %v3218_v43 = vpack.c.bf16 %v2265_v5, %v2264_v4 }
 0xa8d   : > { %2242 = vrot.lane.b32.xlu0 %v1818_v33, %s3410_s30  ;;  %s3928_s30 = scalar_lea.vmem %s3893_s9, %s3523_s29 }
 0xa8e   : > { %v2960_v5 = vld [vmem:[%s3928_s30] ss:$0 sm:$0xff] }
 0xafc   : > { %v2072_v61 = vpop.xlane.xlu0 %2071 }
 0xafd   : > { %3338 = vrcp.f32 %v2072_v61 }
 0xb00   : > { %v2075_v62 = vpop.xlane.xlu0 %2074 }
 0xb01   : > { %3340 = vrcp.f32 %v2075_v62 }
 0xb04   : > { %v2157_v63 = vpop.permute.xlu0 %2156 }
 0xb05   : > { %3138 = vmatpush3.msra.mxu1 %v2157_v63 }
 0xb06   : > { %3219 = vmatprep.subr.bf16.mxu1 %v3218_v43 }
 0xb07   : > { %v3339_v0 = vpop.eup %3338 }
 0xb08   : > { %v2078_v1 = vmul.f32 %v3339_v0, %v3335_v58  ;;  %v2243_v15 = vpop.permute.xlu0 %2242  ;;  %v2510_v58 = vld [vmem:[%s3565_s27 + $0x20] sm:$0xff] }
 0xb09   : > { %v2259_v20 = vsel %vm2258_vm5, %v2256_v17, %v2243_v15  ;;  %v2515_v15 = vld [vmem:[%s3565_s27 + $0x48] sm:$0xff] }
 0xb0a   : > { %3135 = vmatmul.mubr.msk.f32.vlgmr.msra.gmra.mrb[12].mxu0 %vm888_vm3, %v2078_v1  ;;  %v3250_v17 = vpack.c.bf16 %v2515_v15, %v2514_v14  ;;  %v2663_v14 = vld [vmem:[%s3929_s26 + $0x10] sm:$0xff] (!%p2967_p5)  ;;  %v3412_v15 = vmov (!%p2967_p5), 0.0|0.0  }
 0xb0b   : > { %v3341_v2 = vpop.eup %3340  ;;  %3237 = vmatpush3.bf16.msra.mxu0 %v3234_v56 }
 0xb0c   : > { %v2079_v3 = vmul.f32 %v3341_v2, %v3337_v60  ;;  %3239 = vmatprep.subr.bf16.mxu0 %v3238_v57  ;;  %v3242_v60 = vpack.c.bf16 %v2511_v42, %v2510_v58 }
 0xb0e   : > { %3140 = vmatmul.mubr.msk.f32.vlgmr.msra.gmra.mrb[18].mxu1 %vm888_vm3, %v2079_v3  ;;  %v2959_v3 = vld [vmem:[%s3927_s17] ss:$0 sm:$0xff] }
 0xb0f   : > { %3221 = vmatpush3.bf16.msra.mxu1 %v3218_v43  ;;  %3241 = vmatpush3.bf16.msra.mxu0 %v3238_v57 }
 0xb10   : > { %3223 = vmatprep.subr.bf16.mxu1 %v3222_v8  ;;  %3243 = vmatprep.subr.bf16.mxu0 %v3242_v60 }
 0xb13   : > { %3225 = vmatpush3.bf16.msra.mxu1 %v3222_v8  ;;  %3245 = vmatpush3.bf16.msra.mxu0 %v3242_v60 }
 0xb14   : > { %3227 = vmatprep.subr.bf16.mxu1 %v3226_v50 }
 0xbdd   : > { %v2152_v9 = vpop.f32.mrb[12].mxu0 }
 0xbde   : > { %2250 = vrot.lane.b32.xlu0 %v2152_v9, %s3411_s21  ;;  %v3136_v10 = vpop.f32.mrb[13].mxu0 }
 0xbe1   : > { %v2228_v11 = vpop.f32.mrb[18].mxu1 }
 0xbe2   : > { %2252 = vrot.lane.b32.xlu1 %v2228_v11, %s3411_s21  ;;  %v3141_v12 = vpop.f32.mrb[19].mxu1  ;;  %v2512_v11 = vld [vmem:[%s3565_s27 + $0x30] sm:$0xff] }
 0xbe3   : > { %v2513_v12 = vld [vmem:[%s3565_s27 + $0x38] sm:$0xff] }
 0xbe4   : > { %v3246_v13 = vpack.c.bf16 %v2513_v12, %v2512_v11  ;;  %v2661_v12 = vld [vmem:[%s3929_s26] sm:$0xff] (!%p2967_p5) }
 0xbe6   : > { %3247 = vmatprep.subr.bf16.mxu0 %v3246_v13 }
 0xbe7   : > { %3249 = vmatpush3.bf16.msra.mxu0 %v3246_v13  ;;  %v2662_v13 = vld [vmem:[%s3929_s26 + $0x8] sm:$0xff] (!%p2967_p5) }
 0xbe8   : > { %3251 = vmatprep.subr.bf16.mxu0 %v3250_v17 }
 0xbeb   : > { %3253 = vmatpush3.bf16.msra.mxu0 %v3250_v17  ;;  %v3267_v17 = vpack.c.bf16 (!%p2967_p5), %v2662_v13, %v2661_v12 }
 0xc50   : > { %v2251_v21 = vpop.permute.xlu0 %2250 }
 0xc51   : > { %v2262_v22 = vsel %vm2261_vm4, %v2259_v20, %v2251_v21  ;;  %v2517_v20 = vld [vmem:[%s3565_s27 + $0x58] sm:$0xff] }
 0xc52   : > { %3150 = vmatprep.mubr.msk.f32.mxu1 %vm801_vm1, %v2262_v22  ;;  %v3254_v21 = vpack.c.bf16 %v2517_v20, %v2516_v19  ;;  %v2518_v22 = vld [vmem:[%s3565_s27 + $0x60] sm:$0xff]  ;;  %v2664_v19 = vld [vmem:[%s3929_s26 + $0x18] sm:$0xff] (!%p2967_p5)  ;;  %v3414_v20 = vmov (!%p2967_p5), 0.0  }
 0xc54   : > { %v2253_v25 = vpop.permute.xlu1 %2252  ;;  %3255 = vmatprep.subr.bf16.mxu0 %v3254_v21 }
 0xc55   : > { %v2263_v26 = vsel %vm2261_vm4, %v2260_v24, %v2253_v25  ;;  %3257 = vmatpush3.bf16.msra.mxu0 %v3254_v21  ;;  %v3258_v24 = vpack.c.bf16 %v2519_v23, %v2518_v22  ;;  %v2520_v25 = vld [vmem:[%s3565_s27 + $0x70] sm:$0xff]  ;;  %v3270_v21 = vpack.c.bf16 (!%p2967_p5), %v2664_v19, %v2663_v14 }
 0xc56   : > { %3151 = vmatmul.mubr.msk.f32.vlgmr.msra.gmra.mrb[20].mxu1 %vm801_vm1, %v2263_v26  ;;  %v2521_v26 = vld [vmem:[%s3565_s27 + $0x78] sm:$0xff] }
 0xc57   : > { %3229 = vmatpush3.bf16.msra.mxu1 %v3226_v50  ;;  %3259 = vmatprep.subr.bf16.mxu0 %v3258_v24 }
 0xc58   : > { %3231 = vmatprep.subr.bf16.mxu1 %v3230_v38 }
 0xc59   : > { %3261 = vmatpush3.bf16.msra.mxu0 %v3258_v24 }
 0xc5b   : > { %3233 = vmatpush3.bf16.msra.mxu1 %v3230_v38 }
 0xd29   : > { %v3152_v27 = vpop.f32.mrb[20].mxu1 }
 0xd2a   : > { %v2353_v28 = vadd.f32 %v3152_v27, %v2956_v16  ;;  %v2347_v29 = vpop.f32.mrb[21].mxu1  ;;  %v2961_v27 = vld [vmem:[%s719_s6] ss:$0 sm:$0xff]  ;;  %s3930_s6 = sld [smem:[#allocation14_spill]] (!%p2967_p5) }
 0xd2b   : > { %v2348_v30 = vadd.f32 %v2956_v16, %v2347_v29  ;;  %v3262_v16 = vpack.c.bf16 %v2521_v26, %v2520_v25 }
 0xd2c   : > { %v2357_v31 = vadd.f32 %v2353_v28, %v3606_v37 }
 0xd2d   : > { %v2356_v32 = vadd.f32 %v2348_v30, %v3602_v35  ;;  %3263 = vmatprep.subr.bf16.mxu0 %v3262_v16 }
 0xd2e   : > { %v2363_v18 = vsel %vm801_vm1, %v2357_v31, 0.0  ;;  %3265 = vmatpush3.bf16.msra.mxu0 %v3262_v16 }
 0xd2f   : > { %2364 = vadd.xlane.f32.xlu1 %v2363_v18  ;;  %v2360_v33 = vsel %vm801_vm1, %v2356_v32, 0.0  ;;  %3266 = vmatprep.subr.bf16.mxu0 (!%p2967_p5), %v3412_v15 }
 0xd30   : > { %2361 = vadd.xlane.f32.xlu0 %v2360_v33  ;;  %v2968_v24 = vld [vmem:[%s3930_s6] ss:$0 sm:$0xff] (!%p2967_p5) }
 0xdbc   : > { %v2365_v34 = vpop.xlane.xlu1 %2364 }
 0xdbd   : > { %v2368_v36 = vmul.f32 0.03125, %v2365_v34  ;;  %v2362_v39 = vpop.xlane.xlu0 %2361 }
 0xdbe   : > { %v2367_v40 = vmul.f32 0.03125, %v2362_v39 }
 0xdbf   : > { %v2370_v41 = vsub.f32 %v2357_v31, %v2368_v36 }
 0xdc0   : > { %v2369_v44 = vsub.f32 %v2356_v32, %v2367_v40 }
 0xdc1   : > { %v2372_v37 = vmul.f32 %v2370_v41, %v2370_v41 }
 0xdc2   : > { %v2371_v45 = vmul.f32 %v2369_v44, %v2369_v44 }
 0xdc3   : > { %v2376_v46 = vsel %vm801_vm1, %v2372_v37, 0.0 }
 0xdc4   : > { %v2373_v35 = vsel %vm801_vm1, %v2371_v45, 0.0 }
 0xdc5   : > { %2374 = vadd.xlane.f32.xlu0 %v2373_v35  ;;  %v2964_v35 = vld [vmem:[%s727_s0] ss:$0 sm:$0xff] }
 0xdc9   : > { %2377 = vadd.xlane.f32.xlu0 %v2376_v46 }
 0xe52   : > { %v2375_v59 = vpop.xlane.xlu0 %2374 }
 0xe53   : > { %v2379_v61 = vmul.f32 0.03125, %v2375_v59 }
 0xe55   : > { %v2381_v62 = vadd.f32 1e-12, %v2379_v61 }
 0xe56   : > { %v2378_v63 = vpop.xlane.xlu0 %2377 }
 0xe57   : > { %3342 = vrsqrt.f32 %v2381_v62  ;;  %v2380_v0 = vmul.f32 0.03125, %v2378_v63 }
 0xe59   : > { %v2382_v1 = vadd.f32 1e-12, %v2380_v0 }
 0xe5b   : > { %3344 = vrsqrt.f32 %v2382_v1 }
 0xe61   : > { %v3343_v2 = vpop.eup %3342 }
 0xe62   : > { %v2385_v4 = vmul.f32 %v3343_v2, %v2369_v44 }
 0xe64   : > { %v2393_v43 = vmul.f32 %v2959_v3, %v2385_v4  ;;  %v2965_v4 = vld [vmem:[%s730_s20] ss:$0 sm:$0xff] }
 0xe65   : > { %v3345_v6 = vpop.eup %3344 }
 0xe66   : > { %v2386_v7 = vmul.f32 %v3345_v6, %v2370_v41  ;;  %v2401_v8 = vadd.f32 %v2960_v5, %v2393_v43  ;;  %v2966_v6 = vld [vmem:[%s733_s16] ss:$0 sm:$0xff] }
 0xe68   : > { %v2394_v9 = vmul.f32 %v2959_v3, %v2386_v7  ;;  %3161 = vmatprep.mubr.msk.f32.mxu1 %vm801_vm1, %v2401_v8 }
 0xe6a   : > { %v2402_v10 = vadd.f32 %v2960_v5, %v2394_v9 }
 0xe6c   : > { %3162 = vmatmul.mubr.msk.f32.vlgmr.msra.gmra.mrb[22].mxu1 %vm801_vm1, %v2402_v10 }
 0xf3f   : > { %v3163_v28 = vpop.f32.mrb[22].mxu1 }
 0xf40   : > { %v2492_v29 = vadd.f32 %v3163_v28, %v2961_v27  ;;  %v2486_v30 = vpop.f32.mrb[23].mxu1 }
 0xf41   : > { %v2487_v31 = vadd.f32 %v2961_v27, %v2486_v30 }
 0xf42   : > { %v2499_v32 = vmul.f32 0.70710677, %v2492_v29  ;;  %v2496_v41 = vmul.f32 0.5, %v2492_v29 }
 0xf43   : > { %v2498_v18 = vmul.f32 0.70710677, %v2487_v31  ;;  %v2495_v39 = vmul.f32 0.5, %v2487_v31 }
 0xf44   : > { %3346 = verf.f32 %v2499_v32 }
 0xf45   : > { %3348 = verf.f32 %v2498_v18 }
 0xf4e   : > { %v3347_v33 = vpop.eup %3346 }
 0xf4f   : > { %v3349_v34 = vpop.eup %3348  ;;  %v2503_v36 = vadd.f32 1.0, %v3347_v33 }
 0xf50   : > { %v2502_v40 = vadd.f32 1.0, %v3349_v34 }
 0xf51   : > { %v2505_v45 = vmul.f32 %v2503_v36, %v2496_v41 }
 0xf52   : > { %v2504_v44 = vmul.f32 %v2502_v40, %v2495_v39 }
 0xf54   : > { %3196 = vmatprep.mubr.f32.mxu0 %v2504_v44 }
 0xf55   : > { %3197 = vmatmul.mubr.f32.vlgmr.msra.gmra.mrb[14].mxu0 %v2505_v45 }
 0xf56   : > { %3207 = vmatprep.mubr.msk.f32.mxu0 (!%p2967_p5), %vm3413_vm6, %v3414_v20  ;;  %3268 = vmatpush3.bf16.msra.mxu0 (!%p2967_p5), %v3267_v17 }
 0xf57   : > { %3269 = vmatprep.subr.bf16.mxu0 (!%p2967_p5), %v3412_v15 }
 0xf5a   : > { %3271 = vmatpush3.bf16.msra.mxu0 (!%p2967_p5), %v3270_v21 }
0x1028   : > { %v3198_v37 = vpop.f32.mrb[14].mxu0 }
0x1029   : > { %v2601_v46 = vadd.f32 %v3198_v37, %v2964_v35  ;;  %v2595_v48 = vpop.f32.mrb[15].mxu0 }
0x102a   : > { %v2596_v49 = vadd.f32 %v2964_v35, %v2595_v48 }
0x102b   : > { %v2605_v50 = vadd.f32 %v2601_v46, %v2402_v10 }
0x102c   : > { %v2604_v51 = vadd.f32 %v2596_v49, %v2401_v8 }
0x102d   : > { %v2611_v53 = vsel %vm801_vm1, %v2605_v50, 0.0 }
0x102e   : > { %2612 = vadd.xlane.f32.xlu0 %v2611_v53  ;;  %v2608_v38 = vsel %vm801_vm1, %v2604_v51, 0.0 }
0x102f   : > { %2609 = vadd.xlane.f32.xlu1 %v2608_v38 }
0x10bb   : > { %v2613_v47 = vpop.xlane.xlu0 %2612 }
0x10bc   : > { %v2615_v54 = vmul.f32 0.03125, %v2613_v47  ;;  %v2610_v55 = vpop.xlane.xlu1 %2609 }
0x10bd   : > { %v2614_v56 = vmul.f32 0.03125, %v2610_v55 }
0x10be   : > { %v2617_v52 = vsub.f32 %v2605_v50, %v2615_v54 }
0x10bf   : > { %v2616_v57 = vsub.f32 %v2604_v51, %v2614_v56 }
0x10c0   : > { %v2619_v58 = vmul.f32 %v2617_v52, %v2617_v52 }
0x10c1   : > { %v2618_v42 = vmul.f32 %v2616_v57, %v2616_v57 }
0x10c2   : > { %v2623_v60 = vsel %vm801_vm1, %v2619_v58, 0.0 }
0x10c3   : > { %2624 = vadd.xlane.f32.xlu0 %v2623_v60  ;;  %v2620_v59 = vsel %vm801_vm1, %v2618_v42, 0.0 }
0x10c4   : > { %2621 = vadd.xlane.f32.xlu1 %v2620_v59 }
0x1150   : > { %v2625_v61 = vpop.xlane.xlu0 %2624 }
0x1151   : > { %v2627_v62 = vmul.f32 0.03125, %v2625_v61  ;;  %v2622_v63 = vpop.xlane.xlu1 %2621 }
0x1152   : > { %v2626_v0 = vmul.f32 0.03125, %v2622_v63 }
0x1153   : > { %v2629_v1 = vadd.f32 1e-12, %v2627_v62 }
0x1154   : > { %v2628_v2 = vadd.f32 1e-12, %v2626_v0 }
0x1155   : > { %3350 = vrsqrt.f32 %v2629_v1 }
0x1156   : > { %3352 = vrsqrt.f32 %v2628_v2 }
0x115f   : > { %v3351_v3 = vpop.eup %3350 }
0x1160   : > { %v3353_v5 = vpop.eup %3352  ;;  %v2633_v43 = vmul.f32 %v3351_v3, %v2617_v52 }
0x1161   : > { %v2632_v7 = vmul.f32 %v3353_v5, %v2616_v57  ;;  %2655 = sbr.rel (%p2967_p5) target bundleno = 4986 (0x137a), region = 100 }
0x1162   : > { %v2641_v8 = vmul.f32 %v2965_v4, %v2633_v43 }
0x1163   : > { %v2640_v9 = vmul.f32 %v2965_v4, %v2632_v7 }
0x1164   : > { %v2649_v10 = vadd.f32 %v2966_v6, %v2641_v8 }
0x1165   : > { %v2648_v11 = vadd.f32 %v2966_v6, %v2640_v9 }
0x1166   : > { %2651 = vst.msk [vmem:[#allocation2 + $0x8] sm:$0xff] %vm801_vm1, %v2649_v10  ;;  %v2657_v22 = vrot.slane (!%p2967_p5), %v2649_v10, 7 }
0x1167   : > { %2650 = vst.msk [vmem:[#allocation2] sm:$0xff] %vm801_vm1, %v2648_v11 }
0x1168   : > { %v2660_v23 = vsel %vm2659_vm7, %v2648_v11, %v2657_v22 }
0x1169   : > { %3208 = vmatmul.mubr.msk.f32.vlgmr.msra.gmra.mrb[0].mxu0 %vm801_vm1, %v2660_v23 }
0x123c   : > { %v2741_v25 = vpop.f32.mrb[0].mxu0 }
0x123d   : > { %v2742_v26 = vadd.f32 %v2968_v24, %v2741_v25  ;;  %v3209_v16 = vpop.f32.mrb[1].mxu0 }
0x123f   : > { %v2746_v27 = vsel %vm2745_vm8, %v2742_v26, -inf }
0x1240   : > { %2747 = vmax.xlane.f32.xlu0 %v2746_v27 }
0x12cd   : > { %v2748_v28 = vpop.xlane.xlu0 %2747 }
0x12ce   : > { %v2749_v29 = vsub.f32 %v2742_v26, %v2748_v28 }
0x12d0   : > { %v2750_v30 = vmul.f32 1.442695, %v2749_v29 }
0x12d2   : > { %3354 = vpow2.f32 %v2750_v30 }
0x12dc   : > { %v3355_v31 = vpop.eup %3354 }
0x12dd   : > { %v2752_v32 = vsel %vm2745_vm8, %v3355_v31, 0.0 }
0x12de   : > { %2753 = vadd.xlane.f32.xlu0 %v2752_v32 }
0x136b   : > { %v2754_v18 = vpop.xlane.xlu0 %2753 }
0x136c   : > { %3356 = vrcp.f32 %v2754_v18 }
0x1376   : > { %v3357_v33 = vpop.eup %3356 }
0x1377   : > { %v2756_v34 = vmul.f32 %v3357_v33, %v3355_v31 }
0x1379   : > { %2757 = vst.msk [vmem:[#allocation3] sm:$0x3] %vm2745_vm8, %v2756_v34 }
0x137a PF: > { %p3276_p6 = scmp.eq.s32.totalorder %s3517_s28, 1  ;;  %s3415_s27 = smov [#allocation3]  }
0x137b   : > { %s2765_s0 = sshll.u32 %s3415_s27, 4  ;;  %s2766_s0 = int_to_ptr.vmem [resolvable:$true] %s2765_s0 }
0x137c   : > { %s3358_s2 = scalar_lea.vmem %s2766_s0, 32  ;;  %p3365_p10 = scmp.lt.s32.totalorder %s2766_s0, %s2766_s0 }
0x137d   : > { %p3359_p7 = scmp.ne.s32.totalorder %s2766_s0, %s3358_s2  ;;  %p3366_p11 = scmp.lt.s32.totalorder %s3358_s2, %s3358_s2 }
0x137f   : > { %p3360_p8 = pnand %p3359_p7, %p3276_p6  ;;  %p3367_p12 = por %p3366_p11, %p3365_p10 }
0x1381   : > { %p3361_p9 = pneg %p3360_p8 }
0x1383   : > { %p3368_p13 = pnand %p3367_p12, %p3361_p9 }
0x1385   : > { %3371 = shalt.err (!%p3368_p13)
}
0x1386   : > { %s3931_s20 = sld [smem:[#allocation15_spill]] }
0x138c   : > { %s3372_s4 = scalar_lea.hbm %s3931_s20, 32 }
0x138d   : > { %p3373_p0 = scmp.ne.s32.totalorder %s3931_s20, %s3372_s4  ;;  %p3378_p3 = scmp.lt.u32.totalorder %s3372_s4, %s3931_s20 }
0x138f   : > { %p3374_p1 = pnand %p3373_p0, %p3276_p6 }
0x1391   : > { %p3375_p2 = pneg %p3374_p1 }
0x1393   : > { %p3380_p4 = pnand %p3378_p3, %p3375_p2 }
0x1395   : > { %3383 = shalt.err (!%p3380_p4)
}
0x1396   : > { %3273 = dma.vmem_to_hbm [thread:$0]  (%p3276_p6), %s2766_s0, 32, %s3931_s20, [#allocation4]  }
0x1397   : > { %3389 = dma.done.wait (%p3276_p6), [#allocation4], 32  }
0x1398   : > { %3391 = vsyncadd (%p3276_p6), [#allocation4], 4294967264 }
0x1399 PF: > { %s3932_s22 = sld [smem:[#allocation6_spill]] }
0x139f   : > { %s29_s27 = sadd.s32 1, %s3932_s22  }
0x13a0   : > { %p26_p5 = scmp.ge.s32.totalorder %s29_s27, 4  }
0x13a2   :  { %28 = sbr.rel (!%p26_p5) target bundleno = 10 (0xa), region = 160 }
0x13a9   :  { %2778 = vsyncpa [#allocation4], 1 }
0x13aa   :  { %2780 = vsyncpa [#allocation4 + $0x1], 1 }

</bundles_post_ra>
